<compile_context>
chip_gen: v6e
topology: v6e:2x2x1
jax: 0.10.0
libtpu: 0.0.40
codegen_flags: <defaults>
</compile_context>

<pallas_src>
import math
from functools import partial

import jax
import jax.numpy as jnp
from jax import lax
from jax.experimental import pallas as pl
from jax.experimental.pallas import tpu as pltpu


# ----------------------------------------------------------------------------
# Kernel
# ----------------------------------------------------------------------------

def _layernorm(x, gamma, beta, eps):
    """LayerNorm over last dim (biased variance, like torch). x: (S, E)."""
    mean = jnp.mean(x, axis=-1, keepdims=True)
    var = jnp.mean((x - mean) ** 2, axis=-1, keepdims=True)
    inv = lax.rsqrt(var + eps)
    return (x - mean) * inv * gamma + beta


def fused_encoder_kernel(
    xpat_ref, wpe_ref, base_ref,
    wq_ref, wk_ref, wv_ref, wo_ref, bo_ref,
    g1_ref, b1_ref, w1_ref, bf1_ref, w2_ref, bf2_ref, g2_ref, b2_ref,
    ng_ref, nb_ref,
    o_ref,
    *, num_layers, n_heads, head_dim, seq_len,
):
    # xpat_ref: (1, Sp, K)  zero-padded patch vectors (row 0 = cls slot, rows >= S = pad)
    # wpe_ref:  (K, E)      pre-transposed flattened Conv1d weight
    # base_ref: (Sp, E)     row 0 = cls + pos[0]; rows 1..P = pos + conv bias; pad rows = 0
    # stacked per-layer weights: (L, ...), all pre-transposed / block-diagonalized
    Sp, E = o_ref.shape[1], o_ref.shape[2]
    scale = 1.0 / math.sqrt(head_dim)

    # --- patch embed + cls token + pos_embed in one matmul + add
    x = base_ref[...] + jnp.dot(
        xpat_ref[0], wpe_ref[...], preferred_element_type=jnp.float32)   # (Sp, E)

    # mask for the key positions introduced by padding S -> Sp
    key_mask = lax.broadcasted_iota(jnp.int32, (1, 1, Sp), 2) < seq_len

    for l in range(num_layers):     # static unroll; weights already resident in VMEM
        # --- multi-head attention.  Per-head shared (D,D) weights were folded into
        #     block-diagonal (E,E) matrices -> one MXU matmul each for Q, K, V.
        q = jnp.dot(x, wq_ref[l], preferred_element_type=jnp.float32)
        k = jnp.dot(x, wk_ref[l], preferred_element_type=jnp.float32)
        v = jnp.dot(x, wv_ref[l], preferred_element_type=jnp.float32)
        q3 = q.reshape(Sp, n_heads, head_dim)
        k3 = k.reshape(Sp, n_heads, head_dim)
        v3 = v.reshape(Sp, n_heads, head_dim)

        # head-batched scores; contraction expressed directly (no K transpose copy)
        scores = jnp.einsum("shd,thd->hst", q3, k3,
                            preferred_element_type=jnp.float32) * scale   # (H, Sp, Sp)
        scores = jnp.where(key_mask, scores, -1e30)
        scores = scores - jnp.max(scores, axis=-1, keepdims=True)
        e = jnp.exp(scores)
        attn = e * pl.reciprocal(jnp.sum(e, axis=-1, keepdims=True), approx=True)
        ctx = jnp.einsum("hst,thd->shd", attn, v3,
                         preferred_element_type=jnp.float32)              # (Sp, H, D)

        attn_out = jnp.dot(ctx.reshape(Sp, E), wo_ref[l],
                           preferred_element_type=jnp.float32) + bo_ref[l]

        # --- residual + LayerNorm (torch default eps=1e-5); dropout = identity (eval)
        n1 = _layernorm(attn_out + x, g1_ref[l], b1_ref[l], 1e-5)

        # --- FFN: Linear(E,4E) -> ReLU -> Linear(4E,E)
        ff = jnp.dot(n1, w1_ref[l], preferred_element_type=jnp.float32) + bf1_ref[l]
        ff = jnp.maximum(ff, 0.0)
        ff = jnp.dot(ff, w2_ref[l], preferred_element_type=jnp.float32) + bf2_ref[l]

        x = _layernorm(ff + n1, g2_ref[l], b2_ref[l], 1e-5)

    # --- final LayerNorm (eps=1e-6); padded rows are sliced away in the wrapper
    o_ref[0] = _layernorm(x, ng_ref[...], nb_ref[...], 1e-6)


# ----------------------------------------------------------------------------
# Wrapper
# ----------------------------------------------------------------------------

def _round_up(n, m):
    return ((n + m - 1) // m) * m


def fcg_transformer_encoder(x, params, *, patch_size, n_heads):
    """x: (B, C, L) float32 (PyTorch NCW Conv1d layout)."""
    B, C, L = x.shape
    conv_w = params["conv_w"]
    E = conv_w.shape[0]
    P = L // patch_size
    S = 1 + P
    Sp = _round_up(S, 8)                       # pad token dim to a sublane multiple
    K = C * patch_size
    head_dim = E // n_heads
    num_layers = len(params["layers"])

    # ---- host-side layout plumbing (pre-transpose / block-diag / pad), done once ----
    patches = x.reshape(B, C, P, patch_size).transpose(0, 2, 1, 3).reshape(B, P, K)
    xpat = jnp.pad(patches, ((0, 0), (1, Sp - 1 - P), (0, 0)))   # row 0 = cls slot
    wpe_t = conv_w.reshape(E, K).T                                # (K, E)

    base = jnp.zeros((Sp, E), jnp.float32)
    base = base.at[0].set(params["cls_token"][0, 0] + params["pos_embed"][0, 0])
    base = base.at[1:S].set(params["pos_embed"][0, 1:S] + params["conv_b"][None, :])

    eye_h = jnp.eye(n_heads, dtype=jnp.float32)

    def stack(fn):
        return jnp.stack([fn(lp) for lp in params["layers"]], axis=0)

    wq_bd = stack(lambda p: jnp.kron(eye_h, p["wq"].T))   # (L, E, E) block-diagonal
    wk_bd = stack(lambda p: jnp.kron(eye_h, p["wk"].T))
    wv_bd = stack(lambda p: jnp.kron(eye_h, p["wv"].T))
    wo_t = stack(lambda p: p["wo"].T)                      # (L, E, E)
    bo = stack(lambda p: p["bo"].reshape(1, E))
    g1 = stack(lambda p: p["g1"].reshape(1, E))
    b1 = stack(lambda p: p["b1"].reshape(1, E))
    w1_t = stack(lambda p: p["w1"].T)                      # (L, E, 4E)
    bf1 = stack(lambda p: p["bf1"].reshape(1, -1))
    w2_t = stack(lambda p: p["w2"].T)                      # (L, 4E, E)
    bf2 = stack(lambda p: p["bf2"].reshape(1, E))
    g2 = stack(lambda p: p["g2"].reshape(1, E))
    b2 = stack(lambda p: p["b2"].reshape(1, E))
    ng = params["norm_g"].reshape(1, E)
    nb = params["norm_b"].reshape(1, E)

    weights = (wpe_t, base, wq_bd, wk_bd, wv_bd, wo_t, bo, g1, b1,
               w1_t, bf1, w2_t, bf2, g2, b2, ng, nb)

    def full(a):
        n = a.ndim
        return pl.BlockSpec(a.shape, lambda b, n=n: (0,) * n)

    in_specs = [pl.BlockSpec((1, Sp, K), lambda b: (b, 0, 0))] + [full(a) for a in weights]

    kernel = partial(fused_encoder_kernel, num_layers=num_layers,
                     n_heads=n_heads, head_dim=head_dim, seq_len=S)

    out = pl.pallas_call(
        kernel,
        out_shape=jax.ShapeDtypeStruct((B, Sp, E), jnp.float32),
        grid=(B,),
        in_specs=in_specs,
        out_specs=pl.BlockSpec((1, Sp, E), lambda b: (b, 0, 0)),
        compiler_params=pltpu.CompilerParams(dimension_semantics=("parallel",)),
    )(xpat, *weights)

    return out[:, :S, :]


# ----------------------------------------------------------------------------
# Deterministic parameter construction (shapes from the module __init__)
# ----------------------------------------------------------------------------

def make_params(key, *, signal_size, patch_size, ch, embed_dim, n_heads,
                num_layers, expansion_factor):
    E = embed_dim
    D = E // n_heads
    n_patches = signal_size // patch_size
    keys = iter(jax.random.split(key, 8 + 8 * num_layers))

    def rnd(shape, scale=0.02):
        return (scale * jax.random.normal(next(keys), shape)).astype(jnp.float32)

    params = {
        "conv_w": rnd((E, ch, patch_size)),
        "conv_b": rnd((E,)),
        "cls_token": rnd((1, 1, E)),
        "pos_embed": rnd((1, 1 + n_patches, E)),
        "norm_g": jnp.ones((E,), jnp.float32),
        "norm_b": jnp.zeros((E,), jnp.float32),
        "layers": [],
    }
    for _ in range(num_layers):
        params["layers"].append({
            "wq": rnd((D, D)), "wk": rnd((D, D)), "wv": rnd((D, D)),
            "wo": rnd((E, E)), "bo": rnd((1, E)),
            "g1": jnp.ones((1, E), jnp.float32), "b1": jnp.zeros((1, E), jnp.float32),
            "w1": rnd((expansion_factor * E, E)), "bf1": rnd((1, expansion_factor * E)),
            "w2": rnd((E, expansion_factor * E)), "bf2": rnd((1, E)),
            "g2": jnp.ones((1, E), jnp.float32), "b2": jnp.zeros((1, E), jnp.float32),
        })
    return params


# ----------------------------------------------------------------------------
# Main
# ----------------------------------------------------------------------------

if __name__ == "__main__":
    # Small, module-consistent shapes.
    B, CH = 2, 1
    SIGNAL_SIZE, PATCH_SIZE = 128, 16          # -> n_patches = 8, seq = 9 (padded to 16)
    EMBED_DIM, N_HEADS = 64, 4                 # head_dim = 16
    NUM_LAYERS, EXPANSION = 2, 4

    key = jax.random.PRNGKey(0)
    kx, kp = jax.random.split(key)
    x = jax.random.normal(kx, (B, CH, SIGNAL_SIZE), dtype=jnp.float32)

    params = make_params(
        kp, signal_size=SIGNAL_SIZE, patch_size=PATCH_SIZE, ch=CH,
        embed_dim=EMBED_DIM, n_heads=N_HEADS, num_layers=NUM_LAYERS,
        expansion_factor=EXPANSION,
    )

    encoder = jax.jit(partial(fcg_transformer_encoder,
                              patch_size=PATCH_SIZE, n_heads=N_HEADS))
    out = jax.block_until_ready(encoder(x, params))

    assert out.shape == (B, 1 + SIGNAL_SIZE // PATCH_SIZE, EMBED_DIM)
    assert bool(jnp.all(jnp.isfinite(out)))
    print("KERNEL_OK")
</pallas_src>

<mosaic_0001>
module attributes {stable_mosaic.version = 11 : i64} {
  func.func @fused_encoder_kernel(%arg0: i32, %arg1: memref<1x16x16xf32, #tpu.memory_space<vmem>>, %arg2: memref<16x64xf32, #tpu.memory_space<vmem>>, %arg3: memref<16x64xf32, #tpu.memory_space<vmem>>, %arg4: memref<2x64x64xf32, #tpu.memory_space<vmem>>, %arg5: memref<2x64x64xf32, #tpu.memory_space<vmem>>, %arg6: memref<2x64x64xf32, #tpu.memory_space<vmem>>, %arg7: memref<2x64x64xf32, #tpu.memory_space<vmem>>, %arg8: memref<2x1x64xf32, #tpu.memory_space<vmem>>, %arg9: memref<2x1x64xf32, #tpu.memory_space<vmem>>, %arg10: memref<2x1x64xf32, #tpu.memory_space<vmem>>, %arg11: memref<2x64x256xf32, #tpu.memory_space<vmem>>, %arg12: memref<2x1x256xf32, #tpu.memory_space<vmem>>, %arg13: memref<2x256x64xf32, #tpu.memory_space<vmem>>, %arg14: memref<2x1x64xf32, #tpu.memory_space<vmem>>, %arg15: memref<2x1x64xf32, #tpu.memory_space<vmem>>, %arg16: memref<2x1x64xf32, #tpu.memory_space<vmem>>, %arg17: memref<1x64xf32, #tpu.memory_space<vmem>>, %arg18: memref<1x64xf32, #tpu.memory_space<vmem>>, %arg19: memref<1x16x64xf32, #tpu.memory_space<vmem>>) attributes {dimension_semantics = [#tpu.dimension_semantics<parallel>], iteration_bounds = array<i64: 2>, scalar_prefetch = 0 : i64, scratch_operands = 0 : i64, tpu.core_type = #tpu.core_type<tc>, window_params = [{transform_indices = @transform_0, window_bounds = array<i64: 1, 16, 16>}, {pipeline_mode = #tpu.pipeline_mode<synchronous>, transform_indices = @transform_1, window_bounds = array<i64: 16, 64>}, {pipeline_mode = #tpu.pipeline_mode<synchronous>, transform_indices = @transform_2, window_bounds = array<i64: 16, 64>}, {pipeline_mode = #tpu.pipeline_mode<synchronous>, transform_indices = @transform_3, window_bounds = array<i64: 2, 64, 64>}, {pipeline_mode = #tpu.pipeline_mode<synchronous>, transform_indices = @transform_4, window_bounds = array<i64: 2, 64, 64>}, {pipeline_mode = #tpu.pipeline_mode<synchronous>, transform_indices = @transform_5, window_bounds = array<i64: 2, 64, 64>}, {pipeline_mode = #tpu.pipeline_mode<synchronous>, transform_indices = @transform_6, window_bounds = array<i64: 2, 64, 64>}, {pipeline_mode = #tpu.pipeline_mode<synchronous>, transform_indices = @transform_7, window_bounds = array<i64: 2, 1, 64>}, {pipeline_mode = #tpu.pipeline_mode<synchronous>, transform_indices = @transform_8, window_bounds = array<i64: 2, 1, 64>}, {pipeline_mode = #tpu.pipeline_mode<synchronous>, transform_indices = @transform_9, window_bounds = array<i64: 2, 1, 64>}, {pipeline_mode = #tpu.pipeline_mode<synchronous>, transform_indices = @transform_10, window_bounds = array<i64: 2, 64, 256>}, {pipeline_mode = #tpu.pipeline_mode<synchronous>, transform_indices = @transform_11, window_bounds = array<i64: 2, 1, 256>}, {pipeline_mode = #tpu.pipeline_mode<synchronous>, transform_indices = @transform_12, window_bounds = array<i64: 2, 256, 64>}, {pipeline_mode = #tpu.pipeline_mode<synchronous>, transform_indices = @transform_13, window_bounds = array<i64: 2, 1, 64>}, {pipeline_mode = #tpu.pipeline_mode<synchronous>, transform_indices = @transform_14, window_bounds = array<i64: 2, 1, 64>}, {pipeline_mode = #tpu.pipeline_mode<synchronous>, transform_indices = @transform_15, window_bounds = array<i64: 2, 1, 64>}, {pipeline_mode = #tpu.pipeline_mode<synchronous>, transform_indices = @transform_16, window_bounds = array<i64: 1, 64>}, {pipeline_mode = #tpu.pipeline_mode<synchronous>, transform_indices = @transform_17, window_bounds = array<i64: 1, 64>}, {transform_indices = @transform_18, window_bounds = array<i64: 1, 16, 64>}]} {
    %c0 = arith.constant 0 : index
    %c0_0 = arith.constant 0 : index
    %0 = vector.load %arg3[%c0, %c0_0] : memref<16x64xf32, #tpu.memory_space<vmem>>, vector<16x64xf32>
    %c0_1 = arith.constant 0 : index
    %c0_2 = arith.constant 0 : index
    %c0_3 = arith.constant 0 : index
    %1 = vector.load %arg1[%c0_1, %c0_2, %c0_3] : memref<1x16x16xf32, #tpu.memory_space<vmem>>, vector<1x16x16xf32>
    %2 = vector.shape_cast %1 : vector<1x16x16xf32> to vector<16x16xf32>
    %c0_4 = arith.constant 0 : index
    %c0_5 = arith.constant 0 : index
    %3 = vector.load %arg2[%c0_4, %c0_5] : memref<16x64xf32, #tpu.memory_space<vmem>>, vector<16x64xf32>
    %cst = arith.constant dense<0.000000e+00> : vector<16x64xf32>
    %4 = tpu.matmul %2, %3, %cst {dimension_numbers = #tpu.dot_dimension_numbers<[1], [0], [0], [1], [0, 0, 1, 1], [], []>} : vector<16x16xf32>, vector<16x64xf32>, vector<16x64xf32> -> vector<16x64xf32>
    %5 = arith.addf %0, %4 : vector<16x64xf32>
    %6 = tpu.iota {dimensions = array<i32: 2>} : vector<1x1x16xi32>
    %c9_i32 = arith.constant 9 : i32
    %7 = vector.broadcast %c9_i32 : i32 to vector<1x1x16xi32>
    %8 = arith.cmpi slt, %6, %7 : vector<1x1x16xi32>
    %c0_6 = arith.constant 0 : index
    %c0_7 = arith.constant 0 : index
    %c0_8 = arith.constant 0 : index
    %9 = vector.load %arg4[%c0_6, %c0_7, %c0_8] : memref<2x64x64xf32, #tpu.memory_space<vmem>>, vector<1x64x64xf32>
    %10 = vector.shape_cast %9 : vector<1x64x64xf32> to vector<64x64xf32>
    %cst_9 = arith.constant dense<0.000000e+00> : vector<16x64xf32>
    %11 = tpu.matmul %5, %10, %cst_9 {dimension_numbers = #tpu.dot_dimension_numbers<[1], [0], [0], [1], [0, 0, 1, 1], [], []>} : vector<16x64xf32>, vector<64x64xf32>, vector<16x64xf32> -> vector<16x64xf32>
    %c0_10 = arith.constant 0 : index
    %c0_11 = arith.constant 0 : index
    %c0_12 = arith.constant 0 : index
    %12 = vector.load %arg5[%c0_10, %c0_11, %c0_12] : memref<2x64x64xf32, #tpu.memory_space<vmem>>, vector<1x64x64xf32>
    %13 = vector.shape_cast %12 : vector<1x64x64xf32> to vector<64x64xf32>
    %cst_13 = arith.constant dense<0.000000e+00> : vector<16x64xf32>
    %14 = tpu.matmul %5, %13, %cst_13 {dimension_numbers = #tpu.dot_dimension_numbers<[1], [0], [0], [1], [0, 0, 1, 1], [], []>} : vector<16x64xf32>, vector<64x64xf32>, vector<16x64xf32> -> vector<16x64xf32>
    %c0_14 = arith.constant 0 : index
    %c0_15 = arith.constant 0 : index
    %c0_16 = arith.constant 0 : index
    %15 = vector.load %arg6[%c0_14, %c0_15, %c0_16] : memref<2x64x64xf32, #tpu.memory_space<vmem>>, vector<1x64x64xf32>
    %16 = vector.shape_cast %15 : vector<1x64x64xf32> to vector<64x64xf32>
    %cst_17 = arith.constant dense<0.000000e+00> : vector<16x64xf32>
    %17 = tpu.matmul %5, %16, %cst_17 {dimension_numbers = #tpu.dot_dimension_numbers<[1], [0], [0], [1], [0, 0, 1, 1], [], []>} : vector<16x64xf32>, vector<64x64xf32>, vector<16x64xf32> -> vector<16x64xf32>
    %18 = vector.shape_cast %11 : vector<16x64xf32> to vector<16x4x16xf32>
    %19 = vector.shape_cast %14 : vector<16x64xf32> to vector<16x4x16xf32>
    %20 = vector.shape_cast %17 : vector<16x64xf32> to vector<16x4x16xf32>
    "tpu.trace_start"() <{level = 10 : i32, message = "shd,thd->hst"}> : () -> ()
    %cst_18 = arith.constant dense<0.000000e+00> : vector<4x16x16xf32>
    %21 = tpu.matmul %18, %19, %cst_18 {dimension_numbers = #tpu.dot_dimension_numbers<[2], [2], [0], [0], [0, 1, 0, 0, 1, 0], [1], [1]>} : vector<16x4x16xf32>, vector<16x4x16xf32>, vector<4x16x16xf32> -> vector<4x16x16xf32>
    "tpu.trace_stop"() : () -> ()
    %cst_19 = arith.constant 2.500000e-01 : f32
    %22 = vector.broadcast %cst_19 : f32 to vector<4x16x16xf32>
    %23 = arith.mulf %21, %22 : vector<4x16x16xf32>
    %cst_20 = arith.constant -1.000000e+30 : f32
    %24 = vector.shape_cast %8 : vector<1x1x16xi1> to vector<1x1x16xi1>
    %25 = vector.broadcast %24 : vector<1x1x16xi1> to vector<4x16x16xi1>
    %26 = vector.broadcast %cst_20 : f32 to vector<4x16x16xf32>
    %27 = arith.select %25, %23, %26 : vector<4x16x16xi1>, vector<4x16x16xf32>
    %cst_21 = arith.constant dense<0xFF800000> : vector<4x16xf32>
    %28 = vector.multi_reduction <maximumf>, %27, %cst_21 [2] : vector<4x16x16xf32> to vector<4x16xf32>
    %29 = vector.shape_cast %28 : vector<4x16xf32> to vector<4x16x1xf32>
    %30 = vector.broadcast %29 : vector<4x16x1xf32> to vector<4x16x16xf32>
    %31 = arith.subf %27, %30 : vector<4x16x16xf32>
    %32 = math.exp %31 : vector<4x16x16xf32>
    %cst_22 = arith.constant dense<0.000000e+00> : vector<4x16xf32>
    %33 = vector.multi_reduction <add>, %32, %cst_22 [2] : vector<4x16x16xf32> to vector<4x16xf32>
    %34 = vector.shape_cast %33 : vector<4x16xf32> to vector<4x16x1xf32>
    %35 = tpu.reciprocal %34 {approx = true} : vector<4x16x1xf32> -> vector<4x16x1xf32>
    %36 = vector.broadcast %35 : vector<4x16x1xf32> to vector<4x16x16xf32>
    %37 = arith.mulf %32, %36 : vector<4x16x16xf32>
    "tpu.trace_start"() <{level = 10 : i32, message = "hst,thd->shd"}> : () -> ()
    %cst_23 = arith.constant dense<0.000000e+00> : vector<4x16x16xf32>
    %38 = tpu.matmul %20, %37, %cst_23 {dimension_numbers = #tpu.dot_dimension_numbers<[0], [2], [2], [1], [0, 1, 0, 2, 1, 1], [1], [0]>} : vector<16x4x16xf32>, vector<4x16x16xf32>, vector<4x16x16xf32> -> vector<4x16x16xf32>
    %39 = tpu.transpose %38, [2, 0, 1] : vector<4x16x16xf32> -> vector<16x4x16xf32>
    "tpu.trace_stop"() : () -> ()
    %40 = vector.shape_cast %39 : vector<16x4x16xf32> to vector<16x64xf32>
    %c0_24 = arith.constant 0 : index
    %c0_25 = arith.constant 0 : index
    %c0_26 = arith.constant 0 : index
    %41 = vector.load %arg7[%c0_24, %c0_25, %c0_26] : memref<2x64x64xf32, #tpu.memory_space<vmem>>, vector<1x64x64xf32>
    %42 = vector.shape_cast %41 : vector<1x64x64xf32> to vector<64x64xf32>
    %cst_27 = arith.constant dense<0.000000e+00> : vector<16x64xf32>
    %43 = tpu.matmul %40, %42, %cst_27 {dimension_numbers = #tpu.dot_dimension_numbers<[1], [0], [0], [1], [0, 0, 1, 1], [], []>} : vector<16x64xf32>, vector<64x64xf32>, vector<16x64xf32> -> vector<16x64xf32>
    %c0_28 = arith.constant 0 : index
    %c0_29 = arith.constant 0 : index
    %c0_30 = arith.constant 0 : index
    %44 = vector.load %arg8[%c0_28, %c0_29, %c0_30] : memref<2x1x64xf32, #tpu.memory_space<vmem>>, vector<1x1x64xf32>
    %45 = vector.shape_cast %44 : vector<1x1x64xf32> to vector<1x64xf32>
    %46 = vector.broadcast %45 : vector<1x64xf32> to vector<16x64xf32>
    %47 = arith.addf %43, %46 : vector<16x64xf32>
    %48 = arith.addf %47, %5 : vector<16x64xf32>
    %c0_31 = arith.constant 0 : index
    %c0_32 = arith.constant 0 : index
    %c0_33 = arith.constant 0 : index
    %49 = vector.load %arg9[%c0_31, %c0_32, %c0_33] : memref<2x1x64xf32, #tpu.memory_space<vmem>>, vector<1x1x64xf32>
    %50 = vector.shape_cast %49 : vector<1x1x64xf32> to vector<1x64xf32>
    %c0_34 = arith.constant 0 : index
    %c0_35 = arith.constant 0 : index
    %c0_36 = arith.constant 0 : index
    %51 = vector.load %arg10[%c0_34, %c0_35, %c0_36] : memref<2x1x64xf32, #tpu.memory_space<vmem>>, vector<1x1x64xf32>
    %52 = vector.shape_cast %51 : vector<1x1x64xf32> to vector<1x64xf32>
    %cst_37 = arith.constant dense<0.000000e+00> : vector<16xf32>
    %53 = vector.multi_reduction <add>, %48, %cst_37 [1] : vector<16x64xf32> to vector<16xf32>
    %54 = vector.shape_cast %53 : vector<16xf32> to vector<16x1xf32>
    %cst_38 = arith.constant 6.400000e+01 : f32
    %55 = vector.broadcast %cst_38 : f32 to vector<16x1xf32>
    %56 = arith.divf %54, %55 : vector<16x1xf32>
    %57 = vector.broadcast %56 : vector<16x1xf32> to vector<16x64xf32>
    %58 = arith.subf %48, %57 : vector<16x64xf32>
    %59 = arith.mulf %58, %58 : vector<16x64xf32>
    %cst_39 = arith.constant dense<0.000000e+00> : vector<16xf32>
    %60 = vector.multi_reduction <add>, %59, %cst_39 [1] : vector<16x64xf32> to vector<16xf32>
    %61 = vector.shape_cast %60 : vector<16xf32> to vector<16x1xf32>
    %cst_40 = arith.constant 6.400000e+01 : f32
    %62 = vector.broadcast %cst_40 : f32 to vector<16x1xf32>
    %63 = arith.divf %61, %62 : vector<16x1xf32>
    %cst_41 = arith.constant 9.99999974E-6 : f32
    %64 = vector.broadcast %cst_41 : f32 to vector<16x1xf32>
    %65 = arith.addf %63, %64 : vector<16x1xf32>
    %66 = math.rsqrt %65 : vector<16x1xf32>
    %67 = vector.broadcast %56 : vector<16x1xf32> to vector<16x64xf32>
    %68 = arith.subf %48, %67 : vector<16x64xf32>
    %69 = vector.broadcast %66 : vector<16x1xf32> to vector<16x64xf32>
    %70 = arith.mulf %68, %69 : vector<16x64xf32>
    %71 = vector.broadcast %50 : vector<1x64xf32> to vector<16x64xf32>
    %72 = arith.mulf %70, %71 : vector<16x64xf32>
    %73 = vector.broadcast %52 : vector<1x64xf32> to vector<16x64xf32>
    %74 = arith.addf %72, %73 : vector<16x64xf32>
    %c0_42 = arith.constant 0 : index
    %c0_43 = arith.constant 0 : index
    %c0_44 = arith.constant 0 : index
    %75 = vector.load %arg11[%c0_42, %c0_43, %c0_44] : memref<2x64x256xf32, #tpu.memory_space<vmem>>, vector<1x64x256xf32>
    %76 = vector.shape_cast %75 : vector<1x64x256xf32> to vector<64x256xf32>
    %cst_45 = arith.constant dense<0.000000e+00> : vector<16x256xf32>
    %77 = tpu.matmul %74, %76, %cst_45 {dimension_numbers = #tpu.dot_dimension_numbers<[1], [0], [0], [1], [0, 0, 1, 1], [], []>} : vector<16x64xf32>, vector<64x256xf32>, vector<16x256xf32> -> vector<16x256xf32>
    %c0_46 = arith.constant 0 : index
    %c0_47 = arith.constant 0 : index
    %c0_48 = arith.constant 0 : index
    %78 = vector.load %arg12[%c0_46, %c0_47, %c0_48] : memref<2x1x256xf32, #tpu.memory_space<vmem>>, vector<1x1x256xf32>
    %79 = vector.shape_cast %78 : vector<1x1x256xf32> to vector<1x256xf32>
    %80 = vector.broadcast %79 : vector<1x256xf32> to vector<16x256xf32>
    %81 = arith.addf %77, %80 : vector<16x256xf32>
    %cst_49 = arith.constant 0.000000e+00 : f32
    %82 = vector.broadcast %cst_49 : f32 to vector<16x256xf32>
    %83 = arith.maximumf %81, %82 : vector<16x256xf32>
    %c0_50 = arith.constant 0 : index
    %c0_51 = arith.constant 0 : index
    %c0_52 = arith.constant 0 : index
    %84 = vector.load %arg13[%c0_50, %c0_51, %c0_52] : memref<2x256x64xf32, #tpu.memory_space<vmem>>, vector<1x256x64xf32>
    %85 = vector.shape_cast %84 : vector<1x256x64xf32> to vector<256x64xf32>
    %cst_53 = arith.constant dense<0.000000e+00> : vector<16x64xf32>
    %86 = tpu.matmul %83, %85, %cst_53 {dimension_numbers = #tpu.dot_dimension_numbers<[1], [0], [0], [1], [0, 0, 1, 1], [], []>} : vector<16x256xf32>, vector<256x64xf32>, vector<16x64xf32> -> vector<16x64xf32>
    %c0_54 = arith.constant 0 : index
    %c0_55 = arith.constant 0 : index
    %c0_56 = arith.constant 0 : index
    %87 = vector.load %arg14[%c0_54, %c0_55, %c0_56] : memref<2x1x64xf32, #tpu.memory_space<vmem>>, vector<1x1x64xf32>
    %88 = vector.shape_cast %87 : vector<1x1x64xf32> to vector<1x64xf32>
    %89 = vector.broadcast %88 : vector<1x64xf32> to vector<16x64xf32>
    %90 = arith.addf %86, %89 : vector<16x64xf32>
    %91 = arith.addf %90, %74 : vector<16x64xf32>
    %c0_57 = arith.constant 0 : index
    %c0_58 = arith.constant 0 : index
    %c0_59 = arith.constant 0 : index
    %92 = vector.load %arg15[%c0_57, %c0_58, %c0_59] : memref<2x1x64xf32, #tpu.memory_space<vmem>>, vector<1x1x64xf32>
    %93 = vector.shape_cast %92 : vector<1x1x64xf32> to vector<1x64xf32>
    %c0_60 = arith.constant 0 : index
    %c0_61 = arith.constant 0 : index
    %c0_62 = arith.constant 0 : index
    %94 = vector.load %arg16[%c0_60, %c0_61, %c0_62] : memref<2x1x64xf32, #tpu.memory_space<vmem>>, vector<1x1x64xf32>
    %95 = vector.shape_cast %94 : vector<1x1x64xf32> to vector<1x64xf32>
    %cst_63 = arith.constant dense<0.000000e+00> : vector<16xf32>
    %96 = vector.multi_reduction <add>, %91, %cst_63 [1] : vector<16x64xf32> to vector<16xf32>
    %97 = vector.shape_cast %96 : vector<16xf32> to vector<16x1xf32>
    %cst_64 = arith.constant 6.400000e+01 : f32
    %98 = vector.broadcast %cst_64 : f32 to vector<16x1xf32>
    %99 = arith.divf %97, %98 : vector<16x1xf32>
    %100 = vector.broadcast %99 : vector<16x1xf32> to vector<16x64xf32>
    %101 = arith.subf %91, %100 : vector<16x64xf32>
    %102 = arith.mulf %101, %101 : vector<16x64xf32>
    %cst_65 = arith.constant dense<0.000000e+00> : vector<16xf32>
    %103 = vector.multi_reduction <add>, %102, %cst_65 [1] : vector<16x64xf32> to vector<16xf32>
    %104 = vector.shape_cast %103 : vector<16xf32> to vector<16x1xf32>
    %cst_66 = arith.constant 6.400000e+01 : f32
    %105 = vector.broadcast %cst_66 : f32 to vector<16x1xf32>
    %106 = arith.divf %104, %105 : vector<16x1xf32>
    %cst_67 = arith.constant 9.99999974E-6 : f32
    %107 = vector.broadcast %cst_67 : f32 to vector<16x1xf32>
    %108 = arith.addf %106, %107 : vector<16x1xf32>
    %109 = math.rsqrt %108 : vector<16x1xf32>
    %110 = vector.broadcast %99 : vector<16x1xf32> to vector<16x64xf32>
    %111 = arith.subf %91, %110 : vector<16x64xf32>
    %112 = vector.broadcast %109 : vector<16x1xf32> to vector<16x64xf32>
    %113 = arith.mulf %111, %112 : vector<16x64xf32>
    %114 = vector.broadcast %93 : vector<1x64xf32> to vector<16x64xf32>
    %115 = arith.mulf %113, %114 : vector<16x64xf32>
    %116 = vector.broadcast %95 : vector<1x64xf32> to vector<16x64xf32>
    %117 = arith.addf %115, %116 : vector<16x64xf32>
    %c1 = arith.constant 1 : index
    %c0_68 = arith.constant 0 : index
    %c0_69 = arith.constant 0 : index
    %118 = vector.load %arg4[%c1, %c0_68, %c0_69] : memref<2x64x64xf32, #tpu.memory_space<vmem>>, vector<1x64x64xf32>
    %119 = vector.shape_cast %118 : vector<1x64x64xf32> to vector<64x64xf32>
    %cst_70 = arith.constant dense<0.000000e+00> : vector<16x64xf32>
    %120 = tpu.matmul %117, %119, %cst_70 {dimension_numbers = #tpu.dot_dimension_numbers<[1], [0], [0], [1], [0, 0, 1, 1], [], []>} : vector<16x64xf32>, vector<64x64xf32>, vector<16x64xf32> -> vector<16x64xf32>
    %c1_71 = arith.constant 1 : index
    %c0_72 = arith.constant 0 : index
    %c0_73 = arith.constant 0 : index
    %121 = vector.load %arg5[%c1_71, %c0_72, %c0_73] : memref<2x64x64xf32, #tpu.memory_space<vmem>>, vector<1x64x64xf32>
    %122 = vector.shape_cast %121 : vector<1x64x64xf32> to vector<64x64xf32>
    %cst_74 = arith.constant dense<0.000000e+00> : vector<16x64xf32>
    %123 = tpu.matmul %117, %122, %cst_74 {dimension_numbers = #tpu.dot_dimension_numbers<[1], [0], [0], [1], [0, 0, 1, 1], [], []>} : vector<16x64xf32>, vector<64x64xf32>, vector<16x64xf32> -> vector<16x64xf32>
    %c1_75 = arith.constant 1 : index
    %c0_76 = arith.constant 0 : index
    %c0_77 = arith.constant 0 : index
    %124 = vector.load %arg6[%c1_75, %c0_76, %c0_77] : memref<2x64x64xf32, #tpu.memory_space<vmem>>, vector<1x64x64xf32>
    %125 = vector.shape_cast %124 : vector<1x64x64xf32> to vector<64x64xf32>
    %cst_78 = arith.constant dense<0.000000e+00> : vector<16x64xf32>
    %126 = tpu.matmul %117, %125, %cst_78 {dimension_numbers = #tpu.dot_dimension_numbers<[1], [0], [0], [1], [0, 0, 1, 1], [], []>} : vector<16x64xf32>, vector<64x64xf32>, vector<16x64xf32> -> vector<16x64xf32>
    %127 = vector.shape_cast %120 : vector<16x64xf32> to vector<16x4x16xf32>
    %128 = vector.shape_cast %123 : vector<16x64xf32> to vector<16x4x16xf32>
    %129 = vector.shape_cast %126 : vector<16x64xf32> to vector<16x4x16xf32>
    "tpu.trace_start"() <{level = 10 : i32, message = "shd,thd->hst"}> : () -> ()
    %cst_79 = arith.constant dense<0.000000e+00> : vector<4x16x16xf32>
    %130 = tpu.matmul %127, %128, %cst_79 {dimension_numbers = #tpu.dot_dimension_numbers<[2], [2], [0], [0], [0, 1, 0, 0, 1, 0], [1], [1]>} : vector<16x4x16xf32>, vector<16x4x16xf32>, vector<4x16x16xf32> -> vector<4x16x16xf32>
    "tpu.trace_stop"() : () -> ()
    %cst_80 = arith.constant 2.500000e-01 : f32
    %131 = vector.broadcast %cst_80 : f32 to vector<4x16x16xf32>
    %132 = arith.mulf %130, %131 : vector<4x16x16xf32>
    %cst_81 = arith.constant -1.000000e+30 : f32
    %133 = vector.shape_cast %8 : vector<1x1x16xi1> to vector<1x1x16xi1>
    %134 = vector.broadcast %133 : vector<1x1x16xi1> to vector<4x16x16xi1>
    %135 = vector.broadcast %cst_81 : f32 to vector<4x16x16xf32>
    %136 = arith.select %134, %132, %135 : vector<4x16x16xi1>, vector<4x16x16xf32>
    %cst_82 = arith.constant dense<0xFF800000> : vector<4x16xf32>
    %137 = vector.multi_reduction <maximumf>, %136, %cst_82 [2] : vector<4x16x16xf32> to vector<4x16xf32>
    %138 = vector.shape_cast %137 : vector<4x16xf32> to vector<4x16x1xf32>
    %139 = vector.broadcast %138 : vector<4x16x1xf32> to vector<4x16x16xf32>
    %140 = arith.subf %136, %139 : vector<4x16x16xf32>
    %141 = math.exp %140 : vector<4x16x16xf32>
    %cst_83 = arith.constant dense<0.000000e+00> : vector<4x16xf32>
    %142 = vector.multi_reduction <add>, %141, %cst_83 [2] : vector<4x16x16xf32> to vector<4x16xf32>
    %143 = vector.shape_cast %142 : vector<4x16xf32> to vector<4x16x1xf32>
    %144 = tpu.reciprocal %143 {approx = true} : vector<4x16x1xf32> -> vector<4x16x1xf32>
    %145 = vector.broadcast %144 : vector<4x16x1xf32> to vector<4x16x16xf32>
    %146 = arith.mulf %141, %145 : vector<4x16x16xf32>
    "tpu.trace_start"() <{level = 10 : i32, message = "hst,thd->shd"}> : () -> ()
    %cst_84 = arith.constant dense<0.000000e+00> : vector<4x16x16xf32>
    %147 = tpu.matmul %129, %146, %cst_84 {dimension_numbers = #tpu.dot_dimension_numbers<[0], [2], [2], [1], [0, 1, 0, 2, 1, 1], [1], [0]>} : vector<16x4x16xf32>, vector<4x16x16xf32>, vector<4x16x16xf32> -> vector<4x16x16xf32>
    %148 = tpu.transpose %147, [2, 0, 1] : vector<4x16x16xf32> -> vector<16x4x16xf32>
    "tpu.trace_stop"() : () -> ()
    %149 = vector.shape_cast %148 : vector<16x4x16xf32> to vector<16x64xf32>
    %c1_85 = arith.constant 1 : index
    %c0_86 = arith.constant 0 : index
    %c0_87 = arith.constant 0 : index
    %150 = vector.load %arg7[%c1_85, %c0_86, %c0_87] : memref<2x64x64xf32, #tpu.memory_space<vmem>>, vector<1x64x64xf32>
    %151 = vector.shape_cast %150 : vector<1x64x64xf32> to vector<64x64xf32>
    %cst_88 = arith.constant dense<0.000000e+00> : vector<16x64xf32>
    %152 = tpu.matmul %149, %151, %cst_88 {dimension_numbers = #tpu.dot_dimension_numbers<[1], [0], [0], [1], [0, 0, 1, 1], [], []>} : vector<16x64xf32>, vector<64x64xf32>, vector<16x64xf32> -> vector<16x64xf32>
    %c1_89 = arith.constant 1 : index
    %c0_90 = arith.constant 0 : index
    %c0_91 = arith.constant 0 : index
    %153 = vector.load %arg8[%c1_89, %c0_90, %c0_91] : memref<2x1x64xf32, #tpu.memory_space<vmem>>, vector<1x1x64xf32>
    %154 = vector.shape_cast %153 : vector<1x1x64xf32> to vector<1x64xf32>
    %155 = vector.broadcast %154 : vector<1x64xf32> to vector<16x64xf32>
    %156 = arith.addf %152, %155 : vector<16x64xf32>
    %157 = arith.addf %156, %117 : vector<16x64xf32>
    %c1_92 = arith.constant 1 : index
    %c0_93 = arith.constant 0 : index
    %c0_94 = arith.constant 0 : index
    %158 = vector.load %arg9[%c1_92, %c0_93, %c0_94] : memref<2x1x64xf32, #tpu.memory_space<vmem>>, vector<1x1x64xf32>
    %159 = vector.shape_cast %158 : vector<1x1x64xf32> to vector<1x64xf32>
    %c1_95 = arith.constant 1 : index
    %c0_96 = arith.constant 0 : index
    %c0_97 = arith.constant 0 : index
    %160 = vector.load %arg10[%c1_95, %c0_96, %c0_97] : memref<2x1x64xf32, #tpu.memory_space<vmem>>, vector<1x1x64xf32>
    %161 = vector.shape_cast %160 : vector<1x1x64xf32> to vector<1x64xf32>
    %cst_98 = arith.constant dense<0.000000e+00> : vector<16xf32>
    %162 = vector.multi_reduction <add>, %157, %cst_98 [1] : vector<16x64xf32> to vector<16xf32>
    %163 = vector.shape_cast %162 : vector<16xf32> to vector<16x1xf32>
    %cst_99 = arith.constant 6.400000e+01 : f32
    %164 = vector.broadcast %cst_99 : f32 to vector<16x1xf32>
    %165 = arith.divf %163, %164 : vector<16x1xf32>
    %166 = vector.broadcast %165 : vector<16x1xf32> to vector<16x64xf32>
    %167 = arith.subf %157, %166 : vector<16x64xf32>
    %168 = arith.mulf %167, %167 : vector<16x64xf32>
    %cst_100 = arith.constant dense<0.000000e+00> : vector<16xf32>
    %169 = vector.multi_reduction <add>, %168, %cst_100 [1] : vector<16x64xf32> to vector<16xf32>
    %170 = vector.shape_cast %169 : vector<16xf32> to vector<16x1xf32>
    %cst_101 = arith.constant 6.400000e+01 : f32
    %171 = vector.broadcast %cst_101 : f32 to vector<16x1xf32>
    %172 = arith.divf %170, %171 : vector<16x1xf32>
    %cst_102 = arith.constant 9.99999974E-6 : f32
    %173 = vector.broadcast %cst_102 : f32 to vector<16x1xf32>
    %174 = arith.addf %172, %173 : vector<16x1xf32>
    %175 = math.rsqrt %174 : vector<16x1xf32>
    %176 = vector.broadcast %165 : vector<16x1xf32> to vector<16x64xf32>
    %177 = arith.subf %157, %176 : vector<16x64xf32>
    %178 = vector.broadcast %175 : vector<16x1xf32> to vector<16x64xf32>
    %179 = arith.mulf %177, %178 : vector<16x64xf32>
    %180 = vector.broadcast %159 : vector<1x64xf32> to vector<16x64xf32>
    %181 = arith.mulf %179, %180 : vector<16x64xf32>
    %182 = vector.broadcast %161 : vector<1x64xf32> to vector<16x64xf32>
    %183 = arith.addf %181, %182 : vector<16x64xf32>
    %c1_103 = arith.constant 1 : index
    %c0_104 = arith.constant 0 : index
    %c0_105 = arith.constant 0 : index
    %184 = vector.load %arg11[%c1_103, %c0_104, %c0_105] : memref<2x64x256xf32, #tpu.memory_space<vmem>>, vector<1x64x256xf32>
    %185 = vector.shape_cast %184 : vector<1x64x256xf32> to vector<64x256xf32>
    %cst_106 = arith.constant dense<0.000000e+00> : vector<16x256xf32>
    %186 = tpu.matmul %183, %185, %cst_106 {dimension_numbers = #tpu.dot_dimension_numbers<[1], [0], [0], [1], [0, 0, 1, 1], [], []>} : vector<16x64xf32>, vector<64x256xf32>, vector<16x256xf32> -> vector<16x256xf32>
    %c1_107 = arith.constant 1 : index
    %c0_108 = arith.constant 0 : index
    %c0_109 = arith.constant 0 : index
    %187 = vector.load %arg12[%c1_107, %c0_108, %c0_109] : memref<2x1x256xf32, #tpu.memory_space<vmem>>, vector<1x1x256xf32>
    %188 = vector.shape_cast %187 : vector<1x1x256xf32> to vector<1x256xf32>
    %189 = vector.broadcast %188 : vector<1x256xf32> to vector<16x256xf32>
    %190 = arith.addf %186, %189 : vector<16x256xf32>
    %cst_110 = arith.constant 0.000000e+00 : f32
    %191 = vector.broadcast %cst_110 : f32 to vector<16x256xf32>
    %192 = arith.maximumf %190, %191 : vector<16x256xf32>
    %c1_111 = arith.constant 1 : index
    %c0_112 = arith.constant 0 : index
    %c0_113 = arith.constant 0 : index
    %193 = vector.load %arg13[%c1_111, %c0_112, %c0_113] : memref<2x256x64xf32, #tpu.memory_space<vmem>>, vector<1x256x64xf32>
    %194 = vector.shape_cast %193 : vector<1x256x64xf32> to vector<256x64xf32>
    %cst_114 = arith.constant dense<0.000000e+00> : vector<16x64xf32>
    %195 = tpu.matmul %192, %194, %cst_114 {dimension_numbers = #tpu.dot_dimension_numbers<[1], [0], [0], [1], [0, 0, 1, 1], [], []>} : vector<16x256xf32>, vector<256x64xf32>, vector<16x64xf32> -> vector<16x64xf32>
    %c1_115 = arith.constant 1 : index
    %c0_116 = arith.constant 0 : index
    %c0_117 = arith.constant 0 : index
    %196 = vector.load %arg14[%c1_115, %c0_116, %c0_117] : memref<2x1x64xf32, #tpu.memory_space<vmem>>, vector<1x1x64xf32>
    %197 = vector.shape_cast %196 : vector<1x1x64xf32> to vector<1x64xf32>
    %198 = vector.broadcast %197 : vector<1x64xf32> to vector<16x64xf32>
    %199 = arith.addf %195, %198 : vector<16x64xf32>
    %200 = arith.addf %199, %183 : vector<16x64xf32>
    %c1_118 = arith.constant 1 : index
    %c0_119 = arith.constant 0 : index
    %c0_120 = arith.constant 0 : index
    %201 = vector.load %arg15[%c1_118, %c0_119, %c0_120] : memref<2x1x64xf32, #tpu.memory_space<vmem>>, vector<1x1x64xf32>
    %202 = vector.shape_cast %201 : vector<1x1x64xf32> to vector<1x64xf32>
    %c1_121 = arith.constant 1 : index
    %c0_122 = arith.constant 0 : index
    %c0_123 = arith.constant 0 : index
    %203 = vector.load %arg16[%c1_121, %c0_122, %c0_123] : memref<2x1x64xf32, #tpu.memory_space<vmem>>, vector<1x1x64xf32>
    %204 = vector.shape_cast %203 : vector<1x1x64xf32> to vector<1x64xf32>
    %cst_124 = arith.constant dense<0.000000e+00> : vector<16xf32>
    %205 = vector.multi_reduction <add>, %200, %cst_124 [1] : vector<16x64xf32> to vector<16xf32>
    %206 = vector.shape_cast %205 : vector<16xf32> to vector<16x1xf32>
    %cst_125 = arith.constant 6.400000e+01 : f32
    %207 = vector.broadcast %cst_125 : f32 to vector<16x1xf32>
    %208 = arith.divf %206, %207 : vector<16x1xf32>
    %209 = vector.broadcast %208 : vector<16x1xf32> to vector<16x64xf32>
    %210 = arith.subf %200, %209 : vector<16x64xf32>
    %211 = arith.mulf %210, %210 : vector<16x64xf32>
    %cst_126 = arith.constant dense<0.000000e+00> : vector<16xf32>
    %212 = vector.multi_reduction <add>, %211, %cst_126 [1] : vector<16x64xf32> to vector<16xf32>
    %213 = vector.shape_cast %212 : vector<16xf32> to vector<16x1xf32>
    %cst_127 = arith.constant 6.400000e+01 : f32
    %214 = vector.broadcast %cst_127 : f32 to vector<16x1xf32>
    %215 = arith.divf %213, %214 : vector<16x1xf32>
    %cst_128 = arith.constant 9.99999974E-6 : f32
    %216 = vector.broadcast %cst_128 : f32 to vector<16x1xf32>
    %217 = arith.addf %215, %216 : vector<16x1xf32>
    %218 = math.rsqrt %217 : vector<16x1xf32>
    %219 = vector.broadcast %208 : vector<16x1xf32> to vector<16x64xf32>
    %220 = arith.subf %200, %219 : vector<16x64xf32>
    %221 = vector.broadcast %218 : vector<16x1xf32> to vector<16x64xf32>
    %222 = arith.mulf %220, %221 : vector<16x64xf32>
    %223 = vector.broadcast %202 : vector<1x64xf32> to vector<16x64xf32>
    %224 = arith.mulf %222, %223 : vector<16x64xf32>
    %225 = vector.broadcast %204 : vector<1x64xf32> to vector<16x64xf32>
    %226 = arith.addf %224, %225 : vector<16x64xf32>
    %c0_129 = arith.constant 0 : index
    %c0_130 = arith.constant 0 : index
    %227 = vector.load %arg17[%c0_129, %c0_130] : memref<1x64xf32, #tpu.memory_space<vmem>>, vector<1x64xf32>
    %c0_131 = arith.constant 0 : index
    %c0_132 = arith.constant 0 : index
    %228 = vector.load %arg18[%c0_131, %c0_132] : memref<1x64xf32, #tpu.memory_space<vmem>>, vector<1x64xf32>
    %cst_133 = arith.constant dense<0.000000e+00> : vector<16xf32>
    %229 = vector.multi_reduction <add>, %226, %cst_133 [1] : vector<16x64xf32> to vector<16xf32>
    %230 = vector.shape_cast %229 : vector<16xf32> to vector<16x1xf32>
    %cst_134 = arith.constant 6.400000e+01 : f32
    %231 = vector.broadcast %cst_134 : f32 to vector<16x1xf32>
    %232 = arith.divf %230, %231 : vector<16x1xf32>
    %233 = vector.broadcast %232 : vector<16x1xf32> to vector<16x64xf32>
    %234 = arith.subf %226, %233 : vector<16x64xf32>
    %235 = arith.mulf %234, %234 : vector<16x64xf32>
    %cst_135 = arith.constant dense<0.000000e+00> : vector<16xf32>
    %236 = vector.multi_reduction <add>, %235, %cst_135 [1] : vector<16x64xf32> to vector<16xf32>
    %237 = vector.shape_cast %236 : vector<16xf32> to vector<16x1xf32>
    %cst_136 = arith.constant 6.400000e+01 : f32
    %238 = vector.broadcast %cst_136 : f32 to vector<16x1xf32>
    %239 = arith.divf %237, %238 : vector<16x1xf32>
    %cst_137 = arith.constant 9.99999997E-7 : f32
    %240 = vector.broadcast %cst_137 : f32 to vector<16x1xf32>
    %241 = arith.addf %239, %240 : vector<16x1xf32>
    %242 = math.rsqrt %241 : vector<16x1xf32>
    %243 = vector.broadcast %232 : vector<16x1xf32> to vector<16x64xf32>
    %244 = arith.subf %226, %243 : vector<16x64xf32>
    %245 = vector.broadcast %242 : vector<16x1xf32> to vector<16x64xf32>
    %246 = arith.mulf %244, %245 : vector<16x64xf32>
    %247 = vector.broadcast %227 : vector<1x64xf32> to vector<16x64xf32>
    %248 = arith.mulf %246, %247 : vector<16x64xf32>
    %249 = vector.broadcast %228 : vector<1x64xf32> to vector<16x64xf32>
    %250 = arith.addf %248, %249 : vector<16x64xf32>
    %c0_138 = arith.constant 0 : index
    %c0_139 = arith.constant 0 : index
    %c0_140 = arith.constant 0 : index
    %251 = vector.load %arg19[%c0_138, %c0_139, %c0_140] : memref<1x16x64xf32, #tpu.memory_space<vmem>>, vector<1x16x64xf32>
    %252 = vector.shape_cast %251 : vector<1x16x64xf32> to vector<16x64xf32>
    %253 = vector.shape_cast %250 : vector<16x64xf32> to vector<1x16x64xf32>
    tpu.vector_store %arg19[%c0_138, %c0_139, %c0_140], %253 {strides = array<i32>} : memref<1x16x64xf32, #tpu.memory_space<vmem>>, vector<1x16x64xf32>,
    return
  }
  func.func @transform_0(%arg0: i32) -> (i32, i32, i32) {
    %c0_i32 = arith.constant 0 : i32
    %c0_i32_0 = arith.constant 0 : i32
    %c0_i32_1 = arith.constant 0 : i32
    return %arg0, %c0_i32, %c0_i32_0 : i32, i32, i32
  }
  func.func @transform_1(%arg0: i32) -> (i32, i32) {
    %c0_i32 = arith.constant 0 : i32
    %c0_i32_0 = arith.constant 0 : i32
    %c0_i32_1 = arith.constant 0 : i32
    return %c0_i32, %c0_i32_0 : i32, i32
  }
  func.func @transform_2(%arg0: i32) -> (i32, i32) {
    %c0_i32 = arith.constant 0 : i32
    %c0_i32_0 = arith.constant 0 : i32
    %c0_i32_1 = arith.constant 0 : i32
    return %c0_i32, %c0_i32_0 : i32, i32
  }
  func.func @transform_3(%arg0: i32) -> (i32, i32, i32) {
    %c0_i32 = arith.constant 0 : i32
    %c0_i32_0 = arith.constant 0 : i32
    %c0_i32_1 = arith.constant 0 : i32
    %c0_i32_2 = arith.constant 0 : i32
    return %c0_i32, %c0_i32_0, %c0_i32_1 : i32, i32, i32
  }
  func.func @transform_4(%arg0: i32) -> (i32, i32, i32) {
    %c0_i32 = arith.constant 0 : i32
    %c0_i32_0 = arith.constant 0 : i32
    %c0_i32_1 = arith.constant 0 : i32
    %c0_i32_2 = arith.constant 0 : i32
    return %c0_i32, %c0_i32_0, %c0_i32_1 : i32, i32, i32
  }
  func.func @transform_5(%arg0: i32) -> (i32, i32, i32) {
    %c0_i32 = arith.constant 0 : i32
    %c0_i32_0 = arith.constant 0 : i32
    %c0_i32_1 = arith.constant 0 : i32
    %c0_i32_2 = arith.constant 0 : i32
    return %c0_i32, %c0_i32_0, %c0_i32_1 : i32, i32, i32
  }
  func.func @transform_6(%arg0: i32) -> (i32, i32, i32) {
    %c0_i32 = arith.constant 0 : i32
    %c0_i32_0 = arith.constant 0 : i32
    %c0_i32_1 = arith.constant 0 : i32
    %c0_i32_2 = arith.constant 0 : i32
    return %c0_i32, %c0_i32_0, %c0_i32_1 : i32, i32, i32
  }
  func.func @transform_7(%arg0: i32) -> (i32, i32, i32) {
    %c0_i32 = arith.constant 0 : i32
    %c0_i32_0 = arith.constant 0 : i32
    %c0_i32_1 = arith.constant 0 : i32
    %c0_i32_2 = arith.constant 0 : i32
    return %c0_i32, %c0_i32_0, %c0_i32_1 : i32, i32, i32
  }
  func.func @transform_8(%arg0: i32) -> (i32, i32, i32) {
    %c0_i32 = arith.constant 0 : i32
    %c0_i32_0 = arith.constant 0 : i32
    %c0_i32_1 = arith.constant 0 : i32
    %c0_i32_2 = arith.constant 0 : i32
    return %c0_i32, %c0_i32_0, %c0_i32_1 : i32, i32, i32
  }
  func.func @transform_9(%arg0: i32) -> (i32, i32, i32) {
    %c0_i32 = arith.constant 0 : i32
    %c0_i32_0 = arith.constant 0 : i32
    %c0_i32_1 = arith.constant 0 : i32
    %c0_i32_2 = arith.constant 0 : i32
    return %c0_i32, %c0_i32_0, %c0_i32_1 : i32, i32, i32
  }
  func.func @transform_10(%arg0: i32) -> (i32, i32, i32) {
    %c0_i32 = arith.constant 0 : i32
    %c0_i32_0 = arith.constant 0 : i32
    %c0_i32_1 = arith.constant 0 : i32
    %c0_i32_2 = arith.constant 0 : i32
    return %c0_i32, %c0_i32_0, %c0_i32_1 : i32, i32, i32
  }
  func.func @transform_11(%arg0: i32) -> (i32, i32, i32) {
    %c0_i32 = arith.constant 0 : i32
    %c0_i32_0 = arith.constant 0 : i32
    %c0_i32_1 = arith.constant 0 : i32
    %c0_i32_2 = arith.constant 0 : i32
    return %c0_i32, %c0_i32_0, %c0_i32_1 : i32, i32, i32
  }
  func.func @transform_12(%arg0: i32) -> (i32, i32, i32) {
    %c0_i32 = arith.constant 0 : i32
    %c0_i32_0 = arith.constant 0 : i32
    %c0_i32_1 = arith.constant 0 : i32
    %c0_i32_2 = arith.constant 0 : i32
    return %c0_i32, %c0_i32_0, %c0_i32_1 : i32, i32, i32
  }
  func.func @transform_13(%arg0: i32) -> (i32, i32, i32) {
    %c0_i32 = arith.constant 0 : i32
    %c0_i32_0 = arith.constant 0 : i32
    %c0_i32_1 = arith.constant 0 : i32
    %c0_i32_2 = arith.constant 0 : i32
    return %c0_i32, %c0_i32_0, %c0_i32_1 : i32, i32, i32
  }
  func.func @transform_14(%arg0: i32) -> (i32, i32, i32) {
    %c0_i32 = arith.constant 0 : i32
    %c0_i32_0 = arith.constant 0 : i32
    %c0_i32_1 = arith.constant 0 : i32
    %c0_i32_2 = arith.constant 0 : i32
    return %c0_i32, %c0_i32_0, %c0_i32_1 : i32, i32, i32
  }
  func.func @transform_15(%arg0: i32) -> (i32, i32, i32) {
    %c0_i32 = arith.constant 0 : i32
    %c0_i32_0 = arith.constant 0 : i32
    %c0_i32_1 = arith.constant 0 : i32
    %c0_i32_2 = arith.constant 0 : i32
    return %c0_i32, %c0_i32_0, %c0_i32_1 : i32, i32, i32
  }
  func.func @transform_16(%arg0: i32) -> (i32, i32) {
    %c0_i32 = arith.constant 0 : i32
    %c0_i32_0 = arith.constant 0 : i32
    %c0_i32_1 = arith.constant 0 : i32
    return %c0_i32, %c0_i32_0 : i32, i32
  }
  func.func @transform_17(%arg0: i32) -> (i32, i32) {
    %c0_i32 = arith.constant 0 : i32
    %c0_i32_0 = arith.constant 0 : i32
    %c0_i32_1 = arith.constant 0 : i32
    return %c0_i32, %c0_i32_0 : i32, i32
  }
  func.func @transform_18(%arg0: i32) -> (i32, i32, i32) {
    %c0_i32 = arith.constant 0 : i32
    %c0_i32_0 = arith.constant 0 : i32
    %c0_i32_1 = arith.constant 0 : i32
    return %arg0, %c0_i32, %c0_i32_0 : i32, i32, i32
  }
}

</mosaic_0001>

<bundles_post_ra>
// kernel: fcg_transformer_encoder.1
= control target key start
LH: loop header
LB: loop body
LE: loop exit
PB: predicated region body
PF: predicated region fallthrough
CT: control target
= control target key end

     0   :  { %s6049_s27 = smov 0   ;;  %s7014_s0 = inlined_call_operand.vmem [shape: f32[2,16,16], index: 0, kind: input, shape index: {}]   ;;  %s7015_s1 = inlined_call_operand.vmem [shape: f32[16,64], index: 1, kind: input, shape index: {}]   ;;  %s7016_s2 = inlined_call_operand.vmem [shape: f32[16,64], index: 2, kind: input, shape index: {}]   ;;  %s7017_s3 = inlined_call_operand.vmem [shape: f32[2,64,64], index: 3, kind: input, shape index: {}]   ;;  %s7018_s4 = inlined_call_operand.vmem [shape: f32[2,64,64], index: 4, kind: input, shape index: {}]   ;;  %s7019_s5 = inlined_call_operand.vmem [shape: f32[2,64,64], index: 5, kind: input, shape index: {}]   ;;  %s7020_s6 = inlined_call_operand.vmem [shape: f32[2,64,64], index: 6, kind: input, shape index: {}]   ;;  %s7021_s7 = inlined_call_operand.vmem [shape: f32[2,1,64], index: 7, kind: input, shape index: {}]   ;;  %s7022_s8 = inlined_call_operand.vmem [shape: f32[2,1,64], index: 8, kind: input, shape index: {}]   ;;  %s7023_s9 = inlined_call_operand.vmem [shape: f32[2,1,64], index: 9, kind: input, shape index: {}]   ;;  %s7024_s10 = inlined_call_operand.vmem [shape: f32[2,64,256], index: 10, kind: input, shape index: {}]   ;;  %s7025_s11 = inlined_call_operand.vmem [shape: f32[2,1,256], index: 11, kind: input, shape index: {}]   ;;  %s7026_s12 = inlined_call_operand.vmem [shape: f32[2,256,64], index: 12, kind: input, shape index: {}]   ;;  %s7027_s13 = inlined_call_operand.vmem [shape: f32[2,1,64], index: 13, kind: input, shape index: {}]   ;;  %s7028_s14 = inlined_call_operand.vmem [shape: f32[2,1,64], index: 14, kind: input, shape index: {}]   ;;  %s7029_s15 = inlined_call_operand.vmem [shape: f32[2,1,64], index: 15, kind: input, shape index: {}]   ;;  %s7030_s16 = inlined_call_operand.vmem [shape: f32[1,64], index: 16, kind: input, shape index: {}]   ;;  %s7031_s17 = inlined_call_operand.vmem [shape: f32[1,64], index: 17, kind: input, shape index: {}]   ;;  %s7032_s18 = inlined_call_operand.vmem [shape: f32[2,16,64], index: 18, kind: output, shape index: {}]  }
   0x1   :  { %7046 = sst [smem:[#allocation2_spill]] %s7014_s0 }
   0x2   :  { %7047 = sst [smem:[#allocation3_spill]] %s7015_s1 }
   0x3   :  { %7048 = sst [smem:[#allocation4_spill]] %s7016_s2 }
   0x4 LB: > { %s5149_s28 = sadd.s32 4294967295, %s5943_s27   ;;  %p5153_p0 = scmp.ge.s32.totalorder %s5943_s27, 1  ;;  %s5943_s27 = sphi %s6049_s27, %s28_s27  }
   0x5   : > { %p512_p1 = scmp.lt.s32.totalorder %s5943_s27, 3 }
   0x7   : > { %p513_p2 = pnand %p5153_p0, %p512_p1 }
   0x8   : > { %s7049_s0 = sld [smem:[#allocation3_spill]] (!%p513_p2)  ;;  %p566_p3 = scmp.lt.s32.totalorder (!%p513_p2), %s5149_s28, 1 }
   0x9   : > { %516 = sbr.rel (%p513_p2) target bundleno = 5938 (0x1732), region = 92  ;;  %s7050_s1 = sld [smem:[#allocation2_spill]] (!%p513_p2) }
   0xa   : > { %s7051_s26 = sld [smem:[#allocation4_spill]] (!%p513_p2)  ;;  %s5945_s2 = smov (!%p513_p2), 96  }
   0xb   : > { %s7044_s23 = smov (!%p513_p2), 112   ;;  %s7042_s24 = smov (!%p513_p2), 80  }
   0xc   : > { %s7040_s25 = smov (!%p513_p2), 16   ;;  %s7054_s30 = smov (!%p513_p2), 16  }
   0xd   : > { %s7055_s22 = smov (!%p513_p2), 32  }
   0xe   : > { %v581_v0 = vld [vmem:[%s7049_s0 + $0x8] sm:$0xff]  ;;  %v580_v1 = vld [vmem:[%s7049_s0] sm:$0xff]  ;;  %v849_v2 = vld [vmem:[%s7019_s5 + $0x38] sm:$0xff]  ;;  %s7059_s28 = smov (!%p566_p3, %s5149_s28), 1  ;;  %vm582_vm0 = vcmask 130048   ;;  %vm677_vm1 = vcmask 523264   ;;  %v666_v58 = vlaneseq }
   0xf   : > { %5565 = vmatprep.subr.mxu0 %v581_v0  ;;  %v848_v3 = vld [vmem:[%s7019_s5 + $0x30] sm:$0xff]  ;;  %v676_v4 = vld [vmem:[%s7017_s3 + $0x38] sm:$0xff]  ;;  %5610 = vmatprep.subr.mxu1 %v849_v2  ;;  %v847_v5 = vld [vmem:[%s7019_s5 + $0x28] sm:$0xff]  ;;  %s7035_s29 = sshll.u32 %s7059_s28, 4  ;;  %vm2431_vm3 = vcmask 261120   ;;  %vm2434_vm4 = vcmask 392192  }
  0x10   : > { %5566 = vmatpush3.msra.mxu0 %v581_v0  ;;  %5611 = vmatpush3.msra.mxu1 %v849_v2  ;;  %s570_s20 = scalar_lea.vmem %s7050_s1, %s7035_s29  ;;  %v846_v6 = vld [vmem:[%s7019_s5 + $0x20] sm:$0xff]  ;;  %v675_v9 = vld [vmem:[%s7017_s3 + $0x30] sm:$0xff]  ;;  %v845_v10 = vld [vmem:[%s7019_s5 + $0x18] sm:$0xff]  ;;  %v6188_v59 = vand.u32 127, %v666_v58  ;;  %s7038_s1 = smov 32  }
  0x11   : > { %5567 = vmatprep.subr.mxu0 %v580_v1  ;;  %5612 = vmatprep.subr.mxu1 %v848_v3  ;;  %v578_v7 = vld [vmem:[%s570_s20] sm:$0xff]  ;;  %v579_v8 = vld [vmem:[%s570_s20 + $0x8] sm:$0xff]  ;;  %v672_v13 = vld [vmem:[%s7017_s3 + $0x18] sm:$0xff]  ;;  %s7036_s20 = smov 48   ;;  %s7056_s29 = smov 48  }
  0x12   : > { %5568 = vmatpush3.msra.mxu0 %v580_v1  ;;  %5613 = vmatpush3.msra.mxu1 %v848_v3  ;;  %v674_v11 = vld [vmem:[%s7017_s3 + $0x28] sm:$0xff]  ;;  %v673_v12 = vld [vmem:[%s7017_s3 + $0x20] sm:$0xff]  ;;  %v671_v14 = vld [vmem:[%s7017_s3 + $0x10] sm:$0xff]  ;;  %vm668_vm2 = vcmp.lt.s32.totalorder %v6188_v59, 9 }
  0x13   : > { %5572 = vmatprep.subr.mxu0 %v676_v4  ;;  %5614 = vmatprep.subr.mxu1 %v847_v5  ;;  %v844_v15 = vld [vmem:[%s7019_s5 + $0x10] sm:$0xff]  ;;  %v670_v16 = vld [vmem:[%s7017_s3 + $0x8] sm:$0xff]  ;;  %v669_v18 = vld [vmem:[%s7017_s3] sm:$0xff] }
  0x14   : > { %5569 = vmatprep.mubr.msk.f32.mxu0 %vm582_vm0, %v578_v7  ;;  %5615 = vmatpush3.msra.mxu1 %v847_v5  ;;  %v843_v17 = vld [vmem:[%s7019_s5 + $0x8] sm:$0xff]  ;;  %v842_v19 = vld [vmem:[%s7019_s5] sm:$0xff]  ;;  %v766_v20 = vld [vmem:[%s7018_s4 + $0x38] sm:$0xff] }
  0x15   : > { %5570 = vmatmul.mubr.msk.f32.vlgmr.msra.gmra.mxu0 %vm582_vm0, %v579_v8  ;;  %5616 = vmatprep.subr.mxu1 %v846_v6  ;;  %v576_v22 = vld [vmem:[%s7051_s26] sm:$0xff]  ;;  %v577_v23 = vld [vmem:[%s7051_s26 + $0x8] sm:$0xff]  ;;  %v765_v27 = vld [vmem:[%s7018_s4 + $0x30] sm:$0xff] }
  0x16   : > { %5573 = vmatpush3.msra.mxu0 %v676_v4  ;;  %5617 = vmatpush3.msra.mxu1 %v846_v6  ;;  %v764_v28 = vld [vmem:[%s7018_s4 + $0x28] sm:$0xff]  ;;  %v763_v29 = vld [vmem:[%s7018_s4 + $0x20] sm:$0xff]  ;;  %v762_v30 = vld [vmem:[%s7018_s4 + $0x18] sm:$0xff] }
  0x17   : > { %5574 = vmatprep.subr.mxu0 %v675_v9  ;;  %5618 = vmatprep.subr.mxu1 %v845_v10  ;;  %v761_v31 = vld [vmem:[%s7018_s4 + $0x10] sm:$0xff]  ;;  %v760_v32 = vld [vmem:[%s7018_s4 + $0x8] sm:$0xff]  ;;  %v759_v33 = vld [vmem:[%s7018_s4] sm:$0xff] }
  0x18   : > { %5575 = vmatpush3.msra.mxu0 %v675_v9  ;;  %5619 = vmatpush3.msra.mxu1 %v845_v10 }
  0x19   : > { %5576 = vmatprep.subr.mxu0 %v674_v11  ;;  %5620 = vmatprep.subr.mxu1 %v844_v15 }
  0x1a   : > { %5577 = vmatpush3.msra.mxu0 %v674_v11  ;;  %5621 = vmatpush3.msra.mxu1 %v844_v15 }
  0x1b   : > { %5578 = vmatprep.subr.mxu0 %v673_v12  ;;  %5622 = vmatprep.subr.mxu1 %v843_v17 }
  0x1c   : > { %5579 = vmatpush3.msra.mxu0 %v673_v12  ;;  %5623 = vmatpush3.msra.mxu1 %v843_v17 }
  0x1d   : > { %5580 = vmatprep.subr.mxu0 %v672_v13  ;;  %5624 = vmatprep.subr.mxu1 %v842_v19 }
  0x1e   : > { %5581 = vmatpush3.msra.mxu0 %v672_v13  ;;  %5625 = vmatpush3.msra.mxu1 %v842_v19 }
  0x1f   : > { %5582 = vmatprep.subr.mxu0 %v671_v14 }
  0x20   : > { %5583 = vmatpush3.msra.mxu0 %v671_v14 }
  0x21   : > { %5584 = vmatprep.subr.mxu0 %v670_v16 }
  0x22   : > { %5585 = vmatpush3.msra.mxu0 %v670_v16 }
  0x23   : > { %5586 = vmatprep.subr.mxu0 %v669_v18 }
  0x24   : > { %5587 = vmatpush3.msra.mxu0 %v669_v18 }
  0x25   : > { %5591 = vmatprep.subr.mxu0 %v766_v20 }
  0xd5   : > { %v5571_v21 = vpop.f32.mrf.mxu0 }
  0xd6   : > { %v6132_v26 = vadd.f32 %v5571_v21, %v577_v23 }
  0xd7   : > { %v655_v24 = vpop.f32.mrf.mxu0 }
  0xd8   : > { %v6130_v25 = vadd.f32 %v655_v24, %v576_v22 }
  0xda   : > { %5588 = vmatprep.mubr.msk.f32.mxu0 %vm677_vm1, %v6130_v25  ;;  %5626 = vmatprep.mubr.msk.f32.mxu1 %vm677_vm1, %v6130_v25 }
  0xdb   : > { %5589 = vmatmul.mubr.msk.f32.vlgmr.msra.gmra.mxu0 %vm677_vm1, %v6132_v26  ;;  %5627 = vmatmul.mubr.msk.f32.vlgmr.msra.gmra.mxu1 %vm677_vm1, %v6132_v26 }
  0xdc   : > { %5592 = vmatpush3.msra.mxu0 %v766_v20  ;;  %5607 = vmatprep.mubr.msk.f32.mxu0 %vm677_vm1, %v6130_v25 }
  0xdd   : > { %5593 = vmatprep.subr.mxu0 %v765_v27 }
  0xde   : > { %5594 = vmatpush3.msra.mxu0 %v765_v27 }
  0xdf   : > { %5595 = vmatprep.subr.mxu0 %v764_v28 }
  0xe0   : > { %5596 = vmatpush3.msra.mxu0 %v764_v28 }
  0xe1   : > { %5597 = vmatprep.subr.mxu0 %v763_v29 }
  0xe2   : > { %5598 = vmatpush3.msra.mxu0 %v763_v29 }
  0xe3   : > { %5599 = vmatprep.subr.mxu0 %v762_v30 }
  0xe4   : > { %5600 = vmatpush3.msra.mxu0 %v762_v30 }
  0xe5   : > { %5601 = vmatprep.subr.mxu0 %v761_v31 }
  0xe6   : > { %5602 = vmatpush3.msra.mxu0 %v761_v31 }
  0xe7   : > { %5603 = vmatprep.subr.mxu0 %v760_v32 }
  0xe8   : > { %5604 = vmatpush3.msra.mxu0 %v760_v32 }
  0xe9   : > { %5605 = vmatprep.subr.mxu0 %v759_v33 }
  0xea   : > { %5606 = vmatpush3.msra.mxu0 %v759_v33 }
  0xeb   : > { %5608 = vmatmul.mubr.msk.f32.vlgmr.msra.gmra.mxu0 %vm677_vm1, %v6132_v26 }
 0x19b   : > { %v5590_v34 = vpop.f32.mrf.mxu0  ;;  %v5628_v30 = vpop.f32.mrf.mxu1 }
 0x19d   : > { %v750_v35 = vpop.f32.mrf.mxu0  ;;  %v916_v31 = vpop.f32.mrf.mxu1 }
 0x19e   : > { %5633 = vmatprep.mubr.msk.f32.mxu0 %vm582_vm0, %v750_v35 }
 0x1ab   : > { %v5609_v36 = vpop.f32.mrf.mxu0 }
 0x1ac   : > { %949 = vrot.lane.b32.xlu1 %v5609_v36, %s5945_s2 }
 0x1ad   : > { %v833_v37 = vpop.f32.mrf.mxu0 }
 0x1ae   : > { %941 = vrot.lane.b32.xlu0 %v833_v37, %s7044_s23 }
 0x1b0   : > { %955 = vrot.lane.b32.xlu1 %v5609_v36, %s7042_s24 }
 0x1b2   : > { %943 = vrot.lane.b32.xlu0 %v5609_v36, %s7044_s23 }
 0x1b4   : > { %947 = vrot.lane.b32.xlu1 %v833_v37, %s5945_s2 }
 0x1b6   : > { %953 = vrot.lane.b32.xlu0 %v833_v37, %s7042_s24 }
 0x1b8   : > { %929 = vrot.lane.b32.xlu1 %v5590_v34, %s7044_s23 }
 0x1ba   : > { %927 = vrot.lane.b32.xlu0 %v750_v35, %s7044_s23 }
 0x1bc   : > { %933 = vrot.lane.b32.xlu1 %v5590_v34, %s5945_s2 }
 0x1be   : > { %931 = vrot.lane.b32.xlu0 %v750_v35, %s5945_s2 }
 0x1c0   : > { %937 = vrot.lane.b32.xlu1 %v5590_v34, %s7042_s24 }
 0x1c2   : > { %935 = vrot.lane.b32.xlu0 %v750_v35, %s7042_s24 }
 0x1e0   : > { %979 = vxpose.xlu0.b32.start [1/2] (short) (narrow) %v833_v37, 16 }
 0x1e4   : > { %980 = vxpose.xlu0.b32.end [2/2] (short) (narrow) %v5609_v36, 16 }
 0x21e   : > { %v950_v38 = vpop.permute.xlu1 %949 }
 0x220   : > { %v942_v39 = vpop.permute.xlu0 %941 }
 0x221   : > { %1011 = vxpose.xlu1.b32.start [1/2] (short) (narrow) %v942_v39, 16 }
 0x222   : > { %v956_v40 = vpop.permute.xlu1 %955 }
 0x224   : > { %v944_v41 = vpop.permute.xlu0 %943 }
 0x225   : > { %1012 = vxpose.xlu1.b32.end [2/2] (short) (narrow) %v944_v41, 16 }
 0x226   : > { %v948_v42 = vpop.permute.xlu1 %947 }
 0x227   : > { %1043 = vxpose.xlu0.b32.start [1/2] (short) (narrow) %v948_v42, 16 }
 0x228   : > { %v954_v43 = vpop.permute.xlu0 %953 }
 0x22a   : > { %v930_v49 = vpop.permute.xlu1 %929 }
 0x22b   : > { %1044 = vxpose.xlu0.b32.end [2/2] (short) (narrow) %v950_v38, 16 }
 0x22c   : > { %v928_v44 = vpop.permute.xlu0 %927 }
 0x22e   : > { %v934_v50 = vpop.permute.xlu1 %933 }
 0x22f   : > { %1075 = vxpose.xlu0.b32.start [1/2] (short) (narrow) %v954_v43, 16 }
 0x230   : > { %v932_v45 = vpop.permute.xlu0 %931 }
 0x232   : > { %v938_v51 = vpop.permute.xlu1 %937 }
 0x233   : > { %1076 = vxpose.xlu0.b32.end [2/2] (short) (narrow) %v956_v40, 16 }
 0x234   : > { %v936_v46 = vpop.permute.xlu0 %935 }
 0x25c   : > { %v995_v47 = vpop.trf.xlu0 }
 0x260   : > { %v996_v48 = vpop.trf.xlu0 }
 0x261   : > { %5629 = vmatprep.subr.mxu0 %v996_v48 }
 0x262   : > { %5630 = vmatpush3.msra.mxu0 %v996_v48 }
 0x263   : > { %5631 = vmatprep.subr.mxu0 %v995_v47 }
 0x264   : > { %5632 = vmatpush3.msra.mxu0 %v995_v47 }
 0x265   : > { %5634 = vmatmul.mubr.msk.f32.vlgmr.msra.gmra.mxu0 %vm582_vm0, %v5590_v34 }
 0x266   : > { %5640 = vmatprep.mubr.msk.f32.mxu0 %vm582_vm0, %v928_v44 }
 0x29d   : > { %v1027_v52 = vpop.trf.xlu1 }
 0x2a1   : > { %v1028_v53 = vpop.trf.xlu1 }
 0x2a2   : > { %5636 = vmatprep.subr.mxu0 %v1028_v53 }
 0x2a3   : > { %5637 = vmatpush3.msra.mxu0 %v1028_v53  ;;  %v1059_v54 = vpop.trf.xlu0 }
 0x2a4   : > { %5638 = vmatprep.subr.mxu0 %v1027_v52 }
 0x2a5   : > { %5639 = vmatpush3.msra.mxu0 %v1027_v52 }
 0x2a6   : > { %5641 = vmatmul.mubr.msk.f32.vlgmr.msra.gmra.mxu0 %vm582_vm0, %v930_v49 }
 0x2a7   : > { %5647 = vmatprep.mubr.msk.f32.mxu0 %vm582_vm0, %v932_v45  ;;  %v1060_v55 = vpop.trf.xlu0 }
 0x2a8   : > { %5643 = vmatprep.subr.mxu0 %v1060_v55 }
 0x2a9   : > { %5644 = vmatpush3.msra.mxu0 %v1060_v55 }
 0x2aa   : > { %5645 = vmatprep.subr.mxu0 %v1059_v54 }
 0x2ab   : > { %5646 = vmatpush3.msra.mxu0 %v1059_v54  ;;  %v1091_v56 = vpop.trf.xlu0 }
 0x2ac   : > { %5648 = vmatmul.mubr.msk.f32.vlgmr.msra.gmra.mxu0 %vm582_vm0, %v934_v50 }
 0x2ad   : > { %5654 = vmatprep.mubr.msk.f32.mxu0 %vm582_vm0, %v936_v46 }
 0x2af   : > { %v1092_v57 = vpop.trf.xlu0 }
 0x2b0   : > { %5650 = vmatprep.subr.mxu0 %v1092_v57 }
 0x2b1   : > { %5651 = vmatpush3.msra.mxu0 %v1092_v57 }
 0x2b2   : > { %5652 = vmatprep.subr.mxu0 %v1091_v56 }
 0x2b3   : > { %5653 = vmatpush3.msra.mxu0 %v1091_v56 }
 0x2b4   : > { %5655 = vmatmul.mubr.msk.f32.vlgmr.msra.gmra.mxu0 %vm582_vm0, %v938_v51 }
 0x325   : > { %v5635_v60 = vpop.f32.mrf.mxu0 }
 0x326   : > { %v1424_v61 = vmul.f32 0.25, %v5635_v60 }
 0x327   : > { %v1177_v62 = vpop.f32.mrf.mxu0 }
 0x328   : > { %v1423_v63 = vmul.f32 0.25, %v1177_v62  ;;  %v1434_v0 = vsel %vm668_vm2, %v1424_v61, -1e+30 }
 0x329   : > { %v1444_v1 = vsel %vm582_vm0, %v1434_v0, -inf }
 0x32a   : > { %1445 = vmax.xlane.f32.xlu1 %v1444_v1  ;;  %v1433_v2 = vsel %vm668_vm2, %v1423_v63, -1e+30 }
 0x32b   : > { %v1441_v3 = vsel %vm582_vm0, %v1433_v2, -inf }
 0x32e   : > { %1442 = vmax.xlane.f32.xlu1 %v1441_v3 }
 0x366   : > { %v5642_v4 = vpop.f32.mrf.mxu0 }
 0x367   : > { %v1426_v5 = vmul.f32 0.25, %v5642_v4 }
 0x368   : > { %v1256_v6 = vpop.f32.mrf.mxu0 }
 0x369   : > { %v1425_v7 = vmul.f32 0.25, %v1256_v6  ;;  %v1436_v8 = vsel %vm668_vm2, %v1426_v5, -1e+30 }
 0x36a   : > { %v1450_v9 = vsel %vm582_vm0, %v1436_v8, -inf }
 0x36b   : > { %1451 = vmax.xlane.f32.xlu0 %v1450_v9  ;;  %v1435_v10 = vsel %vm668_vm2, %v1425_v7, -1e+30 }
 0x36c   : > { %v5649_v11 = vpop.f32.mrf.mxu0  ;;  %v1447_v12 = vsel %vm582_vm0, %v1435_v10, -inf }
 0x36d   : > { %v1428_v13 = vmul.f32 0.25, %v5649_v11  ;;  %1448 = vmax.xlane.f32.xlu1 %v1447_v12 }
 0x36e   : > { %v1335_v14 = vpop.f32.mrf.mxu0 }
 0x36f   : > { %v1427_v15 = vmul.f32 0.25, %v1335_v14  ;;  %v1438_v16 = vsel %vm668_vm2, %v1428_v13, -1e+30 }
 0x370   : > { %v1456_v17 = vsel %vm582_vm0, %v1438_v16, -inf }
 0x371   : > { %1457 = vmax.xlane.f32.xlu1 %v1456_v17  ;;  %v1437_v18 = vsel %vm668_vm2, %v1427_v15, -1e+30 }
 0x372   : > { %v1453_v20 = vsel %vm582_vm0, %v1437_v18, -inf }
 0x374   : > { %v5656_v19 = vpop.f32.mrf.mxu0 }
 0x375   : > { %v1430_v21 = vmul.f32 0.25, %v5656_v19  ;;  %1454 = vmax.xlane.f32.xlu1 %v1453_v20 }
 0x376   : > { %v1414_v22 = vpop.f32.mrf.mxu0 }
 0x377   : > { %v1429_v23 = vmul.f32 0.25, %v1414_v22  ;;  %v1440_v24 = vsel %vm668_vm2, %v1430_v21, -1e+30 }
 0x378   : > { %v1462_v27 = vsel %vm582_vm0, %v1440_v24, -inf }
 0x379   : > { %1463 = vmax.xlane.f32.xlu0 %v1462_v27  ;;  %v1439_v28 = vsel %vm668_vm2, %v1429_v23, -1e+30 }
 0x37a   : > { %v1459_v29 = vsel %vm582_vm0, %v1439_v28, -inf }
 0x37d   : > { %1460 = vmax.xlane.f32.xlu0 %v1459_v29 }
 0x393   : > { %963 = vrot.lane.b32.xlu0 %v5628_v30, %s7044_s23 }
 0x397   : > { %973 = vrot.lane.b32.xlu0 %v916_v31, %s7042_s24 }
 0x39b   : > { %975 = vrot.lane.b32.xlu0 %v5628_v30, %s7042_s24 }
 0x3a8   : > { %1529 = vxpose.xlu1.b32.start [1/2] (short) (narrow) %v916_v31, 16 }
 0x3ac   : > { %1530 = vxpose.xlu1.b32.end [2/2] (short) (narrow) %v5628_v30, 16 }
 0x3b3   : > { %v1446_v32 = vpop.xlane.xlu1 %1445 }
 0x3b4   : > { %v1466_v33 = vsub.f32 %v1434_v0, %v1446_v32 }
 0x3b6   : > { %v1475_v34 = vmul.f32 1.442695, %v1466_v33 }
 0x3b7   : > { %v1443_v37 = vpop.xlane.xlu1 %1442 }
 0x3b8   : > { %5853 = vpow2.f32 %v1475_v34  ;;  %v1465_v38 = vsub.f32 %v1433_v2, %v1443_v37 }
 0x3ba   : > { %v1473_v39 = vmul.f32 1.442695, %v1465_v38 }
 0x3bc   : > { %5855 = vpow2.f32 %v1473_v39 }
 0x3c5   : > { %v6218_v35 = vpop.eup %5853 }
 0x3c6   : > { %v1492_v36 = vsel %vm582_vm0, %v6218_v35, 0.0 }
 0x3c7   : > { %1493 = vadd.xlane.f32.xlu0 %v1492_v36 }
 0x3c9   : > { %v6225_v40 = vpop.eup %5855 }
 0x3ca   : > { %961 = vrot.lane.b32.xlu1 %v916_v31, %s7044_s23  ;;  %v1489_v43 = vsel %vm582_vm0, %v6225_v40, 0.0  ;;  %s7057_s23 = sshll.u32 %s7059_s28, 4 }
 0x3cb   : > { %s575_s19 = scalar_lea.vmem %s7032_s18, %s7057_s23 }
 0x3ce   : > { %967 = vrot.lane.b32.xlu1 %v916_v31, %s5945_s2 }
 0x3d2   : > { %969 = vrot.lane.b32.xlu1 %v5628_v30, %s5945_s2 }
 0x3f4   : > { %v1452_v41 = vpop.xlane.xlu0 %1451 }
 0x3f5   : > { %v1468_v42 = vsub.f32 %v1436_v8, %v1452_v41 }
 0x3f6   : > { %v1449_v44 = vpop.xlane.xlu1 %1448  ;;  %1490 = vadd.xlane.f32.xlu1 %v1489_v43 }
 0x3f7   : > { %v1479_v45 = vmul.f32 1.442695, %v1468_v42  ;;  %v1467_v46 = vsub.f32 %v1435_v10, %v1449_v44 }
 0x3f9   : > { %5857 = vpow2.f32 %v1479_v45  ;;  %v1477_v47 = vmul.f32 1.442695, %v1467_v46 }
 0x3fa   : > { %v1458_v48 = vpop.xlane.xlu1 %1457 }
 0x3fb   : > { %5859 = vpow2.f32 %v1477_v47  ;;  %v1470_v49 = vsub.f32 %v1438_v16, %v1458_v48 }
 0x3fd   : > { %v1483_v50 = vmul.f32 1.442695, %v1470_v49 }
 0x3fe   : > { %v1455_v51 = vpop.xlane.xlu1 %1454 }
 0x3ff   : > { %5861 = vpow2.f32 %v1483_v50  ;;  %v1469_v52 = vsub.f32 %v1437_v18, %v1455_v51 }
 0x401   : > { %v1481_v53 = vmul.f32 1.442695, %v1469_v52 }
 0x402   : > { %v1464_v54 = vpop.xlane.xlu0 %1463 }
 0x403   : > { %5863 = vpow2.f32 %v1481_v53  ;;  %v1472_v55 = vsub.f32 %v1440_v24, %v1464_v54 }
 0x405   : > { %v1487_v56 = vmul.f32 1.442695, %v1472_v55 }
 0x406   : > { %v5858_v57 = vpop.eup %5857  ;;  %v1461_v60 = vpop.xlane.xlu0 %1460 }
 0x407   : > { %5865 = vpow2.f32 %v1487_v56  ;;  %v1471_v61 = vsub.f32 %v1439_v28, %v1461_v60  ;;  %v1498_v62 = vsel %vm582_vm0, %v5858_v57, 0.0 }
 0x408   : > { %v5860_v63 = vpop.eup %5859  ;;  %1499 = vadd.xlane.f32.xlu0 %v1498_v62  ;;  %v5948_v62 = vmov 1983009808  }
 0x409   : > { %v1485_v0 = vmul.f32 1.442695, %v1471_v61  ;;  %v1495_v1 = vsel %vm582_vm0, %v5860_v63, 0.0 }
 0x40a   : > { %v964_v13 = vpop.permute.xlu0 %963 }
 0x40b   : > { %5867 = vpow2.f32 %v1485_v0 }
 0x40c   : > { %v5862_v2 = vpop.eup %5861  ;;  %1496 = vadd.xlane.f32.xlu0 %v1495_v1  ;;  %v5949_v1 = vmov 1934713408  }
 0x40d   : > { %v1504_v3 = vsel %vm582_vm0, %v5862_v2, 0.0 }
 0x40e   : > { %1505 = vadd.xlane.f32.xlu1 %v1504_v3  ;;  %v974_v15 = vpop.permute.xlu0 %973 }
 0x410   : > { %v5864_v4 = vpop.eup %5863 }
 0x411   : > { %v1501_v5 = vsel %vm582_vm0, %v5864_v4, 0.0 }
 0x412   : > { %1502 = vadd.xlane.f32.xlu1 %v1501_v5  ;;  %v976_v17 = vpop.permute.xlu0 %975 }
 0x414   : > { %v5866_v6 = vpop.eup %5865 }
 0x415   : > { %v1510_v7 = vsel %vm582_vm0, %v5866_v6, 0.0 }
 0x416   : > { %1511 = vadd.xlane.f32.xlu0 %v1510_v7 }
 0x418   : > { %v6234_v8 = vpop.eup %5867 }
 0x419   : > { %v1507_v9 = vsel %vm582_vm0, %v6234_v8, 0.0 }
 0x41a   : > { %1508 = vadd.xlane.f32.xlu0 %v1507_v9 }
 0x424   : > { %v1545_v10 = vpop.trf.xlu1 }
 0x425   : > { %5661 = vmatprep.mubr.msk.f32.mxu1 %vm582_vm0, %v1545_v10 }
 0x428   : > { %v1546_v11 = vpop.trf.xlu1 }
 0x43c   : > { %v962_v12 = vpop.permute.xlu1 %961 }
 0x440   : > { %v968_v14 = vpop.permute.xlu1 %967 }
 0x444   : > { %v970_v16 = vpop.permute.xlu1 %969 }
 0x445   : > { %1593 = vxpose.xlu1.b32.start [1/2] (short) (narrow) %v968_v14, 16 }
 0x447   : > { %1561 = vxpose.xlu0.b32.start [1/2] (short) (narrow) %v962_v12, 16 }
 0x449   : > { %1594 = vxpose.xlu1.b32.end [2/2] (short) (narrow) %v970_v16, 16 }
 0x44b   : > { %1562 = vxpose.xlu0.b32.end [2/2] (short) (narrow) %v964_v13, 16 }
 0x44f   : > { %1625 = vxpose.xlu0.b32.start [1/2] (short) (narrow) %v974_v15, 16 }
 0x450   : > { %v1494_v18 = vpop.xlane.xlu0 %1493 }
 0x451   : > { %5869 = vrcp.f32 %v1494_v18 }
 0x453   : > { %1626 = vxpose.xlu0.b32.end [2/2] (short) (narrow) %v976_v17, 16 }
 0x45e   : > { %v5870_v19 = vpop.eup %5869 }
 0x45f   : > { %v1522_v20 = vmul.f32 %v5870_v19, %v6218_v35 }
 0x461   : > { %5657 = vmatprep.subr.msk.mxu1 %vm582_vm0, %v1522_v20 }
 0x462   : > { %5658 = vmatpush3.xpose.msk.msra.mxu1 %vm582_vm0, %v1522_v20 }
 0x47f   : > { %v1491_v21 = vpop.xlane.xlu1 %1490 }
 0x480   : > { %5871 = vrcp.f32 %v1491_v21 }
 0x48d   : > { %v5872_v22 = vpop.eup %5871 }
 0x48e   : > { %v1521_v23 = vmul.f32 %v5872_v22, %v6225_v40 }
 0x490   : > { %5659 = vmatprep.subr.msk.mxu1 %vm582_vm0, %v1521_v23 }
 0x491   : > { %5660 = vmatpush3.xpose.msk.msra.mxu1 %vm582_vm0, %v1521_v23  ;;  %v1500_v24 = vpop.xlane.xlu0 %1499 }
 0x492   : > { %5873 = vrcp.f32 %v1500_v24 }
 0x494   : > { %5662 = vmatmul.mubr.msk.f32.vlgmr.msra.gmra.mxu1 %vm582_vm0, %v1546_v11 }
 0x495   : > { %v1497_v27 = vpop.xlane.xlu0 %1496 }
 0x496   : > { %5875 = vrcp.f32 %v1497_v27 }
 0x497   : > { %v1506_v28 = vpop.xlane.xlu1 %1505 }
 0x498   : > { %5877 = vrcp.f32 %v1506_v28 }
 0x49b   : > { %v1503_v29 = vpop.xlane.xlu1 %1502 }
 0x49c   : > { %5879 = vrcp.f32 %v1503_v29 }
 0x49f   : > { %v5874_v30 = vpop.eup %5873  ;;  %v1512_v31 = vpop.xlane.xlu0 %1511 }
 0x4a0   : > { %5881 = vrcp.f32 %v1512_v31  ;;  %v1524_v32 = vmul.f32 %v5874_v30, %v5858_v57  ;;  %v2444_v30 = vld [vmem:[%s7020_s6 + $0x38] sm:$0xff]  ;;  %v2443_v31 = vld [vmem:[%s7020_s6 + $0x30] sm:$0xff] }
 0x4a2   : > { %5664 = vmatprep.subr.msk.mxu0 %vm582_vm0, %v1524_v32 }
 0x4a3   : > { %v5876_v33 = vpop.eup %5875  ;;  %5665 = vmatpush3.xpose.msk.msra.mxu0 %vm582_vm0, %v1524_v32  ;;  %v1509_v41 = vpop.xlane.xlu0 %1508 }
 0x4a4   : > { %v1523_v34 = vmul.f32 %v5876_v33, %v5860_v63  ;;  %5883 = vrcp.f32 %v1509_v41  ;;  %v2136_v63 = vunpack.c.l.s4 %v5948_v62 }
 0x4a5   : > { %v5878_v35 = vpop.eup %5877 }
 0x4a6   : > { %5666 = vmatprep.subr.msk.mxu0 %vm582_vm0, %v1523_v34  ;;  %v1526_v36 = vmul.f32 %v5878_v35, %v5862_v2  ;;  %v2168_v2 = vunpack.c.l.s4 %v5949_v1  ;;  %v2137_v3 = vunpack.c.0.s8 %v2136_v63 }
 0x4a7   : > { %5667 = vmatpush3.xpose.msk.msra.mxu0 %vm582_vm0, %v1523_v34 }
 0x4a8   : > { %5671 = vmatprep.subr.msk.mxu1 %vm582_vm0, %v1526_v36  ;;  %v2169_v7 = vunpack.c.0.s8 %v2168_v2 }
 0x4a9   : > { %v5880_v37 = vpop.eup %5879  ;;  %5672 = vmatpush3.xpose.msk.msra.mxu1 %vm582_vm0, %v1526_v36 }
 0x4aa   : > { %v1525_v38 = vmul.f32 %v5880_v37, %v5864_v4  ;;  %v6266_v4 = vshrl.u32 %v666_v58, 7 }
 0x4ac   : > { %5673 = vmatprep.subr.msk.mxu1 %vm582_vm0, %v1525_v38  ;;  %v6272_v15 = vsub.s32 %v2169_v7, %v6266_v4 }
 0x4ad   : > { %v5882_v39 = vpop.eup %5881  ;;  %5674 = vmatpush3.xpose.msk.msra.mxu1 %vm582_vm0, %v1525_v38 }
 0x4ae   : > { %v1528_v40 = vmul.f32 %v5882_v39, %v5866_v6  ;;  %5685 = vmatprep.subr.mxu1 %v2444_v30 }
 0x4b0   : > { %5678 = vmatprep.subr.msk.mxu0 %vm582_vm0, %v1528_v40 }
 0x4b1   : > { %v5884_v44 = vpop.eup %5883 }
 0x4b2   : > { %v1527_v47 = vmul.f32 %v5884_v44, %v6234_v8  ;;  %v6269_v8 = vsub.s32 %v2137_v3, %v6266_v4 }
 0x4c1   : > { %v1609_v42 = vpop.trf.xlu1 }
 0x4c2   : > { %5675 = vmatprep.mubr.msk.f32.mxu1 %vm582_vm0, %v1609_v42 }
 0x4c3   : > { %v1577_v43 = vpop.trf.xlu0 }
 0x4c4   : > { %5668 = vmatprep.mubr.msk.f32.mxu0 %vm582_vm0, %v1577_v43 }
 0x4c5   : > { %v1610_v45 = vpop.trf.xlu1 }
 0x4c6   : > { %5676 = vmatmul.mubr.msk.f32.vlgmr.msra.gmra.mxu1 %vm582_vm0, %v1610_v45 }
 0x4c7   : > { %v1578_v46 = vpop.trf.xlu0  ;;  %5686 = vmatpush3.msra.mxu1 %v2444_v30 }
 0x4c8   : > { %5669 = vmatmul.mubr.msk.f32.vlgmr.msra.gmra.mxu0 %vm582_vm0, %v1578_v46  ;;  %5687 = vmatprep.subr.mxu1 %v2443_v31 }
 0x4c9   : > { %5679 = vmatpush3.xpose.msk.msra.mxu0 %vm582_vm0, %v1528_v40  ;;  %5688 = vmatpush3.msra.mxu1 %v2443_v31 }
 0x4ca   : > { %5680 = vmatprep.subr.msk.mxu0 %vm582_vm0, %v1527_v47 }
 0x4cb   : > { %v1641_v48 = vpop.trf.xlu0 }
 0x4cc   : > { %5682 = vmatprep.mubr.msk.f32.mxu0 %vm582_vm0, %v1641_v48 }
 0x4cd   : > { %5681 = vmatpush3.xpose.msk.msra.mxu0 %vm582_vm0, %v1527_v47 }
 0x4cf   : > { %v1642_v49 = vpop.trf.xlu0 }
 0x4d0   : > { %5683 = vmatmul.mubr.msk.f32.vlgmr.msra.gmra.mxu0 %vm582_vm0, %v1642_v49 }
 0x554   : > { %v5663_v50 = vpop.f32.mrf.mxu1 }
 0x556   : > { %v1735_v51 = vpop.f32.mrf.mxu1 }
 0x557   : > { %2005 = vxpose.xlu1.b32.start [1/2] (short) (narrow) %v1735_v51, 16 }
 0x55b   : > { %2006 = vxpose.xlu1.b32.end [2/2] (short) (narrow) %v5663_v50, 16 }
 0x586   : > { %v5677_v52 = vpop.f32.mrf.mxu1 }
 0x588   : > { %v5670_v53 = vpop.f32.mrf.mxu0  ;;  %v1909_v54 = vpop.f32.mrf.mxu1 }
 0x589   : > { %2069 = vxpose.xlu1.b32.start [1/2] (short) (narrow) %v1909_v54, 16 }
 0x58a   : > { %v1822_v55 = vpop.f32.mrf.mxu0 }
 0x58b   : > { %2037 = vxpose.xlu0.b32.start [1/2] (short) (narrow) %v1822_v55, 16 }
 0x58d   : > { %2070 = vxpose.xlu1.b32.end [2/2] (short) (narrow) %v5677_v52, 16  ;;  %v2442_v52 = vld [vmem:[%s7020_s6 + $0x28] sm:$0xff] }
 0x58e   : > { %5689 = vmatprep.subr.mxu1 %v2442_v52 }
 0x58f   : > { %2038 = vxpose.xlu0.b32.end [2/2] (short) (narrow) %v5670_v53, 16  ;;  %v2441_v53 = vld [vmem:[%s7020_s6 + $0x20] sm:$0xff]  ;;  %5690 = vmatpush3.msra.mxu1 %v2442_v52 }
 0x590   : > { %v5684_v56 = vpop.f32.mrf.mxu0  ;;  %5691 = vmatprep.subr.mxu1 %v2441_v53 }
 0x591   : > { %5692 = vmatpush3.msra.mxu1 %v2441_v53 }
 0x592   : > { %v1996_v57 = vpop.f32.mrf.mxu0 }
 0x593   : > { %2101 = vxpose.xlu0.b32.start [1/2] (short) (narrow) %v1996_v57, 16 }
 0x597   : > { %2102 = vxpose.xlu0.b32.end [2/2] (short) (narrow) %v5684_v56, 16 }
 0x5d3   : > { %v2021_v60 = vpop.trf.xlu1 }
 0x5d7   : > { %v2022_v61 = vpop.trf.xlu1 }
 0x605   : > { %v2085_v5 = vpop.trf.xlu1 }
 0x606   : > { %v2133_v9 = vcombine.low %v2021_v60, %v2085_v5  ;;  %v2134_v10 = vcombine.high %v2021_v60, %v2085_v5  ;;  %v2440_v5 = vld [vmem:[%s7020_s6 + $0x18] sm:$0xff] }
 0x607   : > { %v2053_v0 = vpop.trf.xlu0  ;;  %5693 = vmatprep.subr.mxu1 %v2440_v5 }
 0x608   : > { %v2141_v16 = vrot.slane %v2133_v9, %v6269_v8  ;;  %v2148_v58 = vrot.slane %v2134_v10, %v6269_v8  ;;  %v2439_v9 = vld [vmem:[%s7020_s6 + $0x10] sm:$0xff]  ;;  %5694 = vmatpush3.msra.mxu1 %v2440_v5 }
 0x609   : > { %v2086_v12 = vpop.trf.xlu1  ;;  %5695 = vmatprep.subr.mxu1 %v2439_v9  ;;  %v2594_v5 = vld [vmem:[%s7024_s10 + $0x70] sm:$0xff] }
 0x60a   : > { %v2201_v19 = vcombine.low %v2022_v61, %v2086_v12  ;;  %v2202_v20 = vcombine.high %v2022_v61, %v2086_v12  ;;  %5696 = vmatpush3.msra.mxu1 %v2439_v9  ;;  %v2591_v9 = vld [vmem:[%s7024_s10 + $0x58] sm:$0xff] }
 0x60b   : > { %v2054_v6 = vpop.trf.xlu0 }
 0x60c   : > { %v2209_v36 = vrot.slane %v2201_v19, %v6269_v8  ;;  %v2216_v37 = vrot.slane %v2202_v20, %v6269_v8  ;;  %v2438_v20 = vld [vmem:[%s7020_s6 + $0x8] sm:$0xff] }
 0x60d   : > { %5697 = vmatprep.subr.mxu1 %v2438_v20 }
 0x60e   : > { %5698 = vmatpush3.msra.mxu1 %v2438_v20  ;;  %v2581_v20 = vld [vmem:[%s7024_s10 + $0x8] sm:$0xff] }
 0x60f   : > { %v2117_v11 = vpop.trf.xlu0 }
 0x610   : > { %v2149_v13 = vcombine.low %v2053_v0, %v2117_v11  ;;  %v2150_v14 = vcombine.high %v2053_v0, %v2117_v11 }
 0x612   : > { %v2157_v17 = vrot.slane %v2149_v13, %v6269_v8  ;;  %v2164_v18 = vrot.slane %v2150_v14, %v6269_v8 }
 0x613   : > { %v2118_v21 = vpop.trf.xlu0 }
 0x614   : > { %v2165_v22 = vcombine.low %v2141_v16, %v2157_v17  ;;  %v2166_v23 = vcombine.high %v2141_v16, %v2157_v17  ;;  %v2181_v24 = vcombine.low %v2148_v58, %v2164_v18  ;;  %v2182_v27 = vcombine.high %v2148_v58, %v2164_v18 }
 0x615   : > { %v2217_v28 = vcombine.low %v2054_v6, %v2118_v21  ;;  %v2218_v29 = vcombine.high %v2054_v6, %v2118_v21  ;;  %v2437_v21 = vld [vmem:[%s7020_s6] sm:$0xff] }
 0x616   : > { %v2173_v32 = vrot.slane %v2165_v22, %v6272_v15  ;;  %v2180_v33 = vrot.slane %v2166_v23, %v6272_v15  ;;  %v2189_v34 = vrot.slane %v2181_v24, %v6272_v15  ;;  %v2196_v35 = vrot.slane %v2182_v27, %v6272_v15  ;;  %5699 = vmatprep.subr.mxu1 %v2437_v21 }
 0x617   : > { %v2225_v38 = vrot.slane %v2217_v28, %v6269_v8  ;;  %v2232_v39 = vrot.slane %v2218_v29, %v6269_v8  ;;  %5700 = vmatpush3.msra.mxu1 %v2437_v21  ;;  %v2580_v21 = vld [vmem:[%s7024_s10] sm:$0xff] }
 0x618   : > { %v2269_v40 = vcombine.low %v2173_v32, %v2180_v33  ;;  %v5190_v41 = vcombine.high %v2173_v32, %v2180_v33  ;;  %v2285_v42 = vcombine.low %v2189_v34, %v2196_v35  ;;  %v5191_v43 = vcombine.high %v2189_v34, %v2196_v35 }
 0x619   : > { %v2233_v44 = vcombine.low %v2209_v36, %v2225_v38  ;;  %v2234_v45 = vcombine.high %v2209_v36, %v2225_v38  ;;  %v2249_v46 = vcombine.low %v2216_v37, %v2232_v39  ;;  %v2250_v47 = vcombine.high %v2216_v37, %v2232_v39 }
 0x61a   : > { %v2276_v48 = vrot.slane %v2269_v40, %v6269_v8  ;;  %v2284_v49 = vrot.slane %v5190_v41, %v6269_v8  ;;  %v2292_v50 = vrot.slane %v2285_v42, %v6269_v8  ;;  %v2300_v51 = vrot.slane %v5191_v43, %v6269_v8 }
 0x61b   : > { %v2241_v54 = vrot.slane %v2233_v44, %v6272_v15  ;;  %v2248_v55 = vrot.slane %v2234_v45, %v6272_v15  ;;  %v2257_v56 = vrot.slane %v2249_v46, %v6272_v15  ;;  %v2264_v57 = vrot.slane %v2250_v47, %v6272_v15 }
 0x61c   : > { %v2301_v60 = vcombine.low %v2276_v48, %v2284_v49  ;;  %v2317_v61 = vcombine.low %v2292_v50, %v2300_v51  ;;  %v2302_v62 = vcombine.high %v2276_v48, %v2284_v49  ;;  %v2318_v63 = vcombine.high %v2292_v50, %v2300_v51  ;;  %v5194_v48 = vld [vmem:[%s7021_s7] ss:$0 sm:$0xff] }
 0x61d   : > { %v2337_v0 = vcombine.low %v2241_v54, %v2248_v55  ;;  %v5192_v1 = vcombine.high %v2241_v54, %v2248_v55  ;;  %v2353_v2 = vcombine.low %v2257_v56, %v2264_v57  ;;  %v5193_v3 = vcombine.high %v2257_v56, %v2264_v57 }
 0x61e   : > { %v2309_v6 = vrot.slane %v2301_v60, %v6272_v15  ;;  %v2325_v7 = vrot.slane %v2317_v61, %v6272_v15  ;;  %v2316_v16 = vrot.slane %v2302_v62, %v6272_v15  ;;  %v2332_v58 = vrot.slane %v2318_v63, %v6272_v15 }
 0x61f   : > { %v2344_v10 = vrot.slane %v2337_v0, %v6269_v8  ;;  %v2352_v11 = vrot.slane %v5192_v1, %v6269_v8  ;;  %v2360_v12 = vrot.slane %v2353_v2, %v6269_v8  ;;  %v2368_v13 = vrot.slane %v5193_v3, %v6269_v8  ;;  %v2595_v3 = vld [vmem:[%s7024_s10 + $0x78] sm:$0xff] }
 0x620   : > { %v2334_v14 = vcombine.high %v2309_v6, %v2325_v7  ;;  %v2333_v17 = vcombine.low %v2309_v6, %v2325_v7  ;;  %v2335_v24 = vcombine.low %v2316_v16, %v2332_v58  ;;  %v2336_v31 = vcombine.high %v2316_v16, %v2332_v58  ;;  %2630 = vmatprep.subr.mxu0 %v2595_v3  ;;  %v2593_v6 = vld [vmem:[%s7024_s10 + $0x68] sm:$0xff]  ;;  %v2592_v7 = vld [vmem:[%s7024_s10 + $0x60] sm:$0xff]  ;;  %v2697_v3 = vld [vmem:[%s7026_s12 + $0x10] sm:$0xff] }
 0x621   : > { %v2369_v18 = vcombine.low %v2344_v10, %v2352_v11  ;;  %v2385_v19 = vcombine.low %v2360_v12, %v2368_v13  ;;  %v2370_v27 = vcombine.high %v2344_v10, %v2352_v11  ;;  %v2386_v28 = vcombine.high %v2360_v12, %v2368_v13  ;;  %2631 = vmatpush1.msra.mxu0 %v2594_v5  ;;  %v2590_v10 = vld [vmem:[%s7024_s10 + $0x50] sm:$0xff]  ;;  %v2589_v11 = vld [vmem:[%s7024_s10 + $0x48] sm:$0xff]  ;;  %v2588_v12 = vld [vmem:[%s7024_s10 + $0x40] sm:$0xff] }
 0x622   : > { %2407 = vrot.lane.b32.xlu1 %v2334_v14, %s7040_s25  ;;  %2632 = vmatprep.subr.mxu0 %v2593_v6  ;;  %v2587_v13 = vld [vmem:[%s7024_s10 + $0x38] sm:$0xff]  ;;  %v2586_v14 = vld [vmem:[%s7024_s10 + $0x30] sm:$0xff]  ;;  %v2585_v16 = vld [vmem:[%s7024_s10 + $0x28] sm:$0xff] }
 0x623   : > { %v2377_v22 = vrot.slane %v2369_v18, %v6272_v15  ;;  %v2393_v23 = vrot.slane %v2385_v19, %v6272_v15  ;;  %v2384_v32 = vrot.slane %v2370_v27, %v6272_v15  ;;  %v2400_v33 = vrot.slane %v2386_v28, %v6272_v15  ;;  %2633 = vmatpush1.msra.mxu0 %v2592_v7  ;;  %v2584_v58 = vld [vmem:[%s7024_s10 + $0x20] sm:$0xff]  ;;  %v2582_v18 = vld [vmem:[%s7024_s10 + $0x10] sm:$0xff]  ;;  %v2724_v28 = vld [vmem:[%s7026_s12 + $0xe8] sm:$0xff] }
 0x624   : > { %2634 = vmatprep.subr.mxu0 %v2591_v9  ;;  %v5953_v19 = vmov 0.0   ;;  %v2709_v27 = vld [vmem:[%s7026_s12 + $0x70] sm:$0xff]  ;;  %v2712_v5 = vld [vmem:[%s7026_s12 + $0x88] sm:$0xff]  ;;  %v2711_v7 = vld [vmem:[%s7026_s12 + $0x80] sm:$0xff] }
 0x625   : > { %v2402_v29 = vcombine.high %v2377_v22, %v2393_v23  ;;  %v2401_v30 = vcombine.low %v2377_v22, %v2393_v23  ;;  %v2403_v34 = vcombine.low %v2384_v32, %v2400_v33  ;;  %v2404_v35 = vcombine.high %v2384_v32, %v2400_v33  ;;  %2635 = vmatpush1.msra.mxu0 %v2590_v10  ;;  %v2726_v22 = vld [vmem:[%s7026_s12 + $0xf8] sm:$0xff]  ;;  %v2696_v6 = vld [vmem:[%s7026_s12 + $0x8] sm:$0xff]  ;;  %v2695_v9 = vld [vmem:[%s7026_s12] sm:$0xff] }
 0x626   : > { %2415 = vrot.lane.b32.xlu1 %v2335_v24, %s7038_s1  ;;  %2636 = vmatprep.subr.mxu0 %v2589_v11  ;;  %v2710_v23 = vld [vmem:[%s7026_s12 + $0x78] sm:$0xff]  ;;  %v2725_v24 = vld [vmem:[%s7026_s12 + $0xf0] sm:$0xff]  ;;  %v2600_v10 = vsub.s32 0, %v6266_v4  ;;  %v2596_v11 = vld [vmem:[%s7025_s11] sm:$0x3] }
 0x627   : > { %2409 = vrot.lane.b32.xlu0 %v2402_v29, %s7040_s25  ;;  %2637 = vmatpush1.msra.mxu0 %v2588_v12  ;;  %v2708_v29 = vld [vmem:[%s7026_s12 + $0x68] sm:$0xff]  ;;  %v2722_v32 = vld [vmem:[%s7026_s12 + $0xd8] sm:$0xff]  ;;  %v2604_v12 = vsub.s32 1, %v6266_v4  ;;  %s7052_s25 = smov 112   ;;  %v5330_v4 = vld [vmem:[%s7027_s13 + $0x1] ss:$0 sm:$0xff] }
 0x628   : > { %2638 = vmatprep.subr.mxu0 %v2587_v13  ;;  %2678 = vmatprep.mubr.f32.mxu0 %v5953_v19  ;;  %v2706_v33 = vld [vmem:[%s7026_s12 + $0x58] sm:$0xff]  ;;  %v2601_v13 = vrot.slane %v2596_v11, %v2600_v10 }
 0x629   : > { %2639 = vmatpush1.msra.mxu0 %v2586_v14  ;;  %5417 = vmatprep.subr.mxu1 %v2726_v22  ;;  %v2605_v14 = vrot.slane %v2596_v11, %v2604_v12 }
 0x62a   : > { %2423 = vrot.lane.b32.xlu1 %v2336_v31, %s7036_s20  ;;  %2640 = vmatprep.subr.mxu0 %v2585_v16  ;;  %v2707_v31 = vld [vmem:[%s7026_s12 + $0x60] sm:$0xff] }
 0x62b   : > { %2641 = vmatpush1.msra.mxu0 %v2584_v58 }
 0x62e   : > { %2417 = vrot.lane.b32.xlu1 %v2403_v34, %s7038_s1  ;;  %v2721_v34 = vld [vmem:[%s7026_s12 + $0xd0] sm:$0xff]  ;;  %s7053_s1 = smov 80  }
 0x632   : > { %2425 = vrot.lane.b32.xlu1 %v2404_v35, %s7036_s20  ;;  %v2705_v35 = vld [vmem:[%s7026_s12 + $0x50] sm:$0xff] }
 0x694   : > { %v2408_v36 = vpop.permute.xlu1 %2407 }
 0x695   : > { %v2429_v38 = vsel %vm582_vm0, %v2333_v17, %v2408_v36  ;;  %v2583_v17 = vld [vmem:[%s7024_s10 + $0x18] sm:$0xff]  ;;  %v2720_v36 = vld [vmem:[%s7026_s12 + $0xc8] sm:$0xff] }
 0x696   : > { %2642 = vmatprep.subr.mxu0 %v2583_v17 }
 0x697   : > { %2643 = vmatpush1.msra.mxu0 %v2582_v18 }
 0x698   : > { %v2416_v37 = vpop.permute.xlu1 %2415  ;;  %2644 = vmatprep.subr.mxu0 %v2581_v20 }
 0x699   : > { %v2432_v39 = vsel %vm2431_vm3, %v2429_v38, %v2416_v37  ;;  %v2410_v42 = vpop.permute.xlu0 %2409  ;;  %2645 = vmatpush1.msra.mxu0 %v2580_v21  ;;  %v2704_v37 = vld [vmem:[%s7026_s12 + $0x48] sm:$0xff]  ;;  %v2719_v38 = vld [vmem:[%s7026_s12 + $0xc0] sm:$0xff] }
 0x69a   : > { %v2430_v44 = vsel %vm582_vm0, %v2401_v30, %v2410_v42  ;;  %v2723_v30 = vld [vmem:[%s7026_s12 + $0xe0] sm:$0xff]  ;;  %v2717_v42 = vld [vmem:[%s7026_s12 + $0xb0] sm:$0xff] }
 0x69c   : > { %v2424_v40 = vpop.permute.xlu1 %2423 }
 0x69d   : > { %v2435_v41 = vsel %vm2434_vm4, %v2432_v39, %v2424_v40  ;;  %v2703_v39 = vld [vmem:[%s7026_s12 + $0x40] sm:$0xff]  ;;  %v2718_v40 = vld [vmem:[%s7026_s12 + $0xb8] sm:$0xff] }
 0x69e   : > { %5701 = vmatprep.mubr.msk.f32.mxu1 %vm677_vm1, %v2435_v41  ;;  %v2702_v41 = vld [vmem:[%s7026_s12 + $0x38] sm:$0xff] }
 0x6a0   : > { %v2418_v43 = vpop.permute.xlu1 %2417 }
 0x6a1   : > { %v2433_v45 = vsel %vm2431_vm3, %v2430_v44, %v2418_v43  ;;  %v2701_v43 = vld [vmem:[%s7026_s12 + $0x30] sm:$0xff]  ;;  %v2716_v44 = vld [vmem:[%s7026_s12 + $0xa8] sm:$0xff] }
 0x6a4   : > { %v2426_v46 = vpop.permute.xlu1 %2425 }
 0x6a5   : > { %v2436_v47 = vsel %vm2434_vm4, %v2433_v45, %v2426_v46  ;;  %v2700_v45 = vld [vmem:[%s7026_s12 + $0x28] sm:$0xff]  ;;  %v2715_v46 = vld [vmem:[%s7026_s12 + $0xa0] sm:$0xff] }
 0x6a6   : > { %5702 = vmatmul.mubr.msk.f32.vlgmr.msra.gmra.mxu1 %vm677_vm1, %v2436_v47  ;;  %v2699_v47 = vld [vmem:[%s7026_s12 + $0x20] sm:$0xff] }
 0x6a7   : > { %5418 = vmatpush3.msra.mxu1 %v2710_v23 }
 0x6a8   : > { %5419 = vmatprep.subr.mxu1 %v2725_v24 }
 0x6a9   : > { %5420 = vmatpush3.msra.mxu1 %v2709_v27 }
 0x6aa   : > { %5421 = vmatprep.subr.mxu1 %v2724_v28 }
 0x6ab   : > { %5422 = vmatpush3.msra.mxu1 %v2708_v29 }
 0x6ac   : > { %5423 = vmatprep.subr.mxu1 %v2723_v30 }
 0x6ad   : > { %5424 = vmatpush3.msra.mxu1 %v2707_v31  ;;  %v5201_v31 = vld [vmem:[%s7027_s13] ss:$0 sm:$0xff] }
 0x6ae   : > { %5425 = vmatprep.subr.mxu1 %v2722_v32 }
 0x6af   : > { %5426 = vmatpush3.msra.mxu1 %v2706_v33 }
 0x6b0   : > { %5427 = vmatprep.subr.mxu1 %v2721_v34 }
 0x6b1   : > { %5428 = vmatpush3.msra.mxu1 %v2705_v35 }
 0x6b2   : > { %5429 = vmatprep.subr.mxu1 %v2720_v36 }
 0x6b3   : > { %5430 = vmatpush3.msra.mxu1 %v2704_v37 }
 0x6b4   : > { %5431 = vmatprep.subr.mxu1 %v2719_v38 }
 0x6b5   : > { %5432 = vmatpush3.msra.mxu1 %v2703_v39 }
 0x6b6   : > { %5433 = vmatprep.subr.mxu1 %v2718_v40 }
 0x6b7   : > { %5434 = vmatpush3.msra.mxu1 %v2702_v41 }
 0x6b8   : > { %5435 = vmatprep.subr.mxu1 %v2717_v42 }
 0x6b9   : > { %5436 = vmatpush3.msra.mxu1 %v2701_v43 }
 0x6ba   : > { %5437 = vmatprep.subr.mxu1 %v2716_v44 }
 0x6bb   : > { %5438 = vmatpush3.msra.mxu1 %v2700_v45 }
 0x6bc   : > { %5439 = vmatprep.subr.mxu1 %v2715_v46 }
 0x6bd   : > { %5440 = vmatpush3.msra.mxu1 %v2699_v47 }
 0x766   : > { %v5703_v49 = vpop.f32.mrf.mxu1 }
 0x767   : > { %v2530_v50 = vadd.f32 %v5703_v49, %v5194_v48 }
 0x768   : > { %v2524_v51 = vpop.f32.mrf.mxu1 }
 0x769   : > { %v2525_v52 = vadd.f32 %v5194_v48, %v2524_v51  ;;  %v2534_v53 = vadd.f32 %v2530_v50, %v6132_v26 }
 0x76b   : > { %v2540_v54 = vsel %vm677_vm1, %v2534_v53, 0.0  ;;  %v2533_v55 = vadd.f32 %v2525_v52, %v6130_v25 }
 0x76c   : > { %2541 = vadd.xlane.f32.xlu1 %v2540_v54 }
 0x76d   : > { %v2537_v56 = vsel %vm677_vm1, %v2533_v55, 0.0 }
 0x76e   : > { %2538 = vadd.xlane.f32.xlu0 %v2537_v56 }
 0x7f5   : > { %v2542_v57 = vpop.xlane.xlu1 %2541 }
 0x7f6   : > { %v2545_v60 = vmul.f32 0.015625, %v2542_v57  ;;  %v5198_v57 = vld [vmem:[%s7023_s9] ss:$0 sm:$0xff] }
 0x7f7   : > { %v2539_v61 = vpop.xlane.xlu0 %2538 }
 0x7f8   : > { %v2544_v62 = vmul.f32 0.015625, %v2539_v61  ;;  %v6351_v63 = vsub.f32 %v2534_v53, %v2545_v60 }
 0x7fa   : > { %v6353_v0 = vsub.f32 %v2533_v55, %v2544_v62  ;;  %v2549_v25 = vmul.f32 %v6351_v63, %v6351_v63  ;;  %v5197_v55 = vld [vmem:[%s7022_s8] ss:$0 sm:$0xff] }
 0x7fc   : > { %v2548_v1 = vmul.f32 %v6353_v0, %v6353_v0  ;;  %v2553_v2 = vsel %vm677_vm1, %v2549_v25, 0.0 }
 0x7fe   : > { %v2550_v26 = vsel %vm677_vm1, %v2548_v1, 0.0 }
 0x7ff   : > { %2551 = vadd.xlane.f32.xlu0 %v2550_v26 }
 0x803   : > { %2554 = vadd.xlane.f32.xlu0 %v2553_v2  ;;  %v2698_v2 = vld [vmem:[%s7026_s12 + $0x18] sm:$0xff] }
 0x888   : > { %v2552_v48 = vpop.xlane.xlu0 %2551 }
 0x889   : > { %v2556_v49 = vmul.f32 0.015625, %v2552_v48 }
 0x88b   : > { %v2558_v50 = vadd.f32 1e-05, %v2556_v49 }
 0x88c   : > { %v2555_v51 = vpop.xlane.xlu0 %2554 }
 0x88d   : > { %5885 = vrsqrt.f32 %v2558_v50  ;;  %v2557_v52 = vmul.f32 0.015625, %v2555_v51 }
 0x88f   : > { %v2559_v53 = vadd.f32 1e-05, %v2557_v52 }
 0x891   : > { %5887 = vrsqrt.f32 %v2559_v53  ;;  %v5211_v53 = vld [vmem:[%s7017_s3 + $0x78] sm:$0xff] }
 0x892   : > { %5704 = vmatprep.subr.mxu0 %v5211_v53 }
 0x89a   : > { %v5886_v54 = vpop.eup %5885 }
 0x89b   : > { %v2562_v56 = vmul.f32 %v5886_v54, %v6353_v0  ;;  %v2714_v0 = vld [vmem:[%s7026_s12 + $0x98] sm:$0xff] }
 0x89c   : > { %5441 = vmatprep.subr.mxu1 %v2714_v0  ;;  %v5231_v54 = vld [vmem:[%s7019_s5 + $0x78] sm:$0xff]  ;;  %v5226_v0 = vld [vmem:[%s7019_s5 + $0x50] sm:$0xff] }
 0x89d   : > { %v2570_v60 = vmul.f32 %v5197_v55, %v2562_v56  ;;  %5442 = vmatpush3.msra.mxu1 %v2698_v2  ;;  %v5230_v56 = vld [vmem:[%s7019_s5 + $0x70] sm:$0xff]  ;;  %v5205_v2 = vld [vmem:[%s7017_s3 + $0x48] sm:$0xff] }
 0x89e   : > { %v5888_v61 = vpop.eup %5887 }
 0x89f   : > { %v2578_v62 = vadd.f32 %v5198_v57, %v2570_v60  ;;  %v2563_v1 = vmul.f32 %v5888_v61, %v6351_v63  ;;  %v2713_v63 = vld [vmem:[%s7026_s12 + $0x90] sm:$0xff]  ;;  %v5229_v60 = vld [vmem:[%s7019_s5 + $0x68] sm:$0xff]  ;;  %v5208_v61 = vld [vmem:[%s7017_s3 + $0x60] sm:$0xff] }
 0x8a0   : > { %5443 = vmatprep.subr.mxu1 %v2713_v63  ;;  %v5225_v63 = vld [vmem:[%s7019_s5 + $0x48] sm:$0xff] }
 0x8a1   : > { %5199 = vmatmul.mubr.msk.f32.vlgmr.msra.gmra.mxu0 %vm677_vm1, %v2578_v62  ;;  %v2571_v26 = vmul.f32 %v5197_v55, %v2563_v1  ;;  %5444 = vmatpush3.msra.mxu1 %v2697_v3  ;;  %v5210_v55 = vld [vmem:[%s7017_s3 + $0x70] sm:$0xff]  ;;  %v5207_v1 = vld [vmem:[%s7017_s3 + $0x58] sm:$0xff]  ;;  %v5204_v3 = vld [vmem:[%s7017_s3 + $0x40] sm:$0xff] }
 0x8a2   : > { %2684 = vmatprep.mubr.f32.mxu0 %v5953_v19  ;;  %5445 = vmatprep.subr.mxu1 %v2712_v5  ;;  %v5224_v5 = vld [vmem:[%s7019_s5 + $0x40] sm:$0xff] }
 0x8a3   : > { %v2579_v25 = vadd.f32 %v5198_v57, %v2571_v26  ;;  %5446 = vmatpush3.msra.mxu1 %v2696_v6  ;;  %5705 = vmatpush3.msra.mxu0 %v5211_v53  ;;  %v5209_v57 = vld [vmem:[%s7017_s3 + $0x68] sm:$0xff]  ;;  %v5227_v26 = vld [vmem:[%s7019_s5 + $0x58] sm:$0xff] }
 0x8a4   : > { %5447 = vmatprep.subr.mxu1 %v2711_v7  ;;  %5706 = vmatprep.subr.mxu0 %v5210_v55  ;;  %v5221_v6 = vld [vmem:[%s7018_s4 + $0x78] sm:$0xff] }
 0x8a5   : > { %5200 = vmatmul.mubr.msk.f32.gmra.mxu0 %vm677_vm1, %v2579_v25  ;;  %5448 = vmatpush3.msra.mxu1 %v2695_v9 }
 0x8a6   : > { %5742 = vmatprep.subr.mxu1 %v5231_v54  ;;  %5707 = vmatpush3.msra.mxu0 %v5210_v55 }
 0x8a7   : > { %5708 = vmatprep.subr.mxu0 %v5209_v57 }
 0x8a8   : > { %5709 = vmatpush3.msra.mxu0 %v5209_v57 }
 0x8a9   : > { %5710 = vmatprep.subr.mxu0 %v5208_v61 }
 0x8aa   : > { %5711 = vmatpush3.msra.mxu0 %v5208_v61 }
 0x8ab   : > { %5712 = vmatprep.subr.mxu0 %v5207_v1 }
 0x8ac   : > { %5713 = vmatpush3.msra.mxu0 %v5207_v1 }
 0x961   : > { %v2680_v16 = vpop.f32.mrf.mxu0 }
 0x962   : > { %v2681_v58 = vadd.f32 %v2680_v16, %v2601_v13 }
 0x963   : > { %v2682_v17 = vpop.f32.mrf.mxu0 }
 0x964   : > { %v2683_v18 = vadd.f32 %v2682_v17, %v2605_v14  ;;  %v2691_v22 = vmax.f32 %v2681_v58, 0.0  ;;  %v5202_v17 = vld [vmem:[%s7028_s14] ss:$0 sm:$0xff] }
 0x965   : > { %v2686_v20 = vpop.f32.mrf.mxu0 }
 0x966   : > { %v2692_v21 = vmax.f32 %v2683_v18, 0.0  ;;  %v2687_v23 = vadd.f32 %v2686_v20, %v2601_v13  ;;  %v5203_v20 = vld [vmem:[%s7029_s15] ss:$0 sm:$0xff] }
 0x967   : > { %v2688_v24 = vpop.f32.mrf.mxu0 }
 0x968   : > { %v2689_v27 = vadd.f32 %v2688_v24, %v2605_v14  ;;  %2798 = vmatprep.mubr.f32.mxu1 %v2692_v21  ;;  %v2693_v29 = vmax.f32 %v2687_v23, 0.0 }
 0x969   : > { %2799 = vmatmul.mubr.f32.vlgmr.msra.gmra.mxu1 %v2691_v22 }
 0x96a   : > { %v2694_v28 = vmax.f32 %v2689_v27, 0.0  ;;  %5743 = vmatpush3.msra.mxu1 %v5231_v54 }
 0x96b   : > { %5744 = vmatprep.subr.mxu1 %v5230_v56 }
 0x96c   : > { %2803 = vmatprep.mubr.f32.mxu1 %v2694_v28  ;;  %5745 = vmatpush3.msra.mxu1 %v5230_v56 }
 0x96d   : > { %2804 = vmatmul.mubr.f32.gmra.mxu1 %v2693_v29  ;;  %5746 = vmatprep.subr.mxu1 %v5229_v60  ;;  %v5220_v29 = vld [vmem:[%s7018_s4 + $0x70] sm:$0xff] }
 0x96e   : > { %5747 = vmatpush3.msra.mxu1 %v5229_v60 }
 0xa29   : > { %v5449_v30 = vpop.f32.mrf.mxu1 }
 0xa2b   : > { %v5450_v32 = vpop.f32.mrf.mxu1 }
 0xa2c   : > { %v5451_v33 = vadd.f32 %v5450_v32, %v5449_v30  ;;  %v5219_v30 = vld [vmem:[%s7018_s4 + $0x68] sm:$0xff]  ;;  %v5217_v32 = vld [vmem:[%s7018_s4 + $0x58] sm:$0xff] }
 0xa2d   : > { %v5452_v34 = vpop.f32.mrf.mxu1 }
 0xa2e   : > { %v2801_v35 = vadd.f32 %v5451_v33, %v5201_v31  ;;  %v5216_v33 = vld [vmem:[%s7018_s4 + $0x50] sm:$0xff] }
 0xa2f   : > { %v5453_v36 = vpop.f32.mrf.mxu1 }
 0xa30   : > { %v5454_v37 = vadd.f32 %v5453_v36, %v5452_v34  ;;  %v2809_v38 = vadd.f32 %v2801_v35, %v2578_v62  ;;  %v5228_v62 = vld [vmem:[%s7019_s5 + $0x60] sm:$0xff]  ;;  %v5215_v34 = vld [vmem:[%s7018_s4 + $0x48] sm:$0xff] }
 0xa31   : > { %5748 = vmatprep.subr.mxu1 %v5228_v62  ;;  %v5214_v35 = vld [vmem:[%s7018_s4 + $0x40] sm:$0xff] }
 0xa32   : > { %v2806_v39 = vadd.f32 %v5454_v37, %v5201_v31  ;;  %v2813_v40 = vsel %vm677_vm1, %v2809_v38, 0.0  ;;  %5749 = vmatpush3.msra.mxu1 %v5228_v62  ;;  %v5218_v31 = vld [vmem:[%s7018_s4 + $0x60] sm:$0xff] }
 0xa33   : > { %2814 = vadd.xlane.f32.xlu1 %v2813_v40  ;;  %5750 = vmatprep.subr.mxu1 %v5227_v26 }
 0xa34   : > { %v2810_v41 = vadd.f32 %v2806_v39, %v2579_v25  ;;  %v5206_v25 = vld [vmem:[%s7017_s3 + $0x50] sm:$0xff]  ;;  %5751 = vmatpush3.msra.mxu1 %v5227_v26 }
 0xa35   : > { %5714 = vmatprep.subr.mxu0 %v5206_v25  ;;  %5752 = vmatprep.subr.mxu1 %v5226_v0 }
 0xa36   : > { %v2816_v42 = vsel %vm677_vm1, %v2810_v41, 0.0  ;;  %5715 = vmatpush3.msra.mxu0 %v5206_v25  ;;  %5753 = vmatpush3.msra.mxu1 %v5226_v0 }
 0xa37   : > { %2817 = vadd.xlane.f32.xlu0 %v2816_v42  ;;  %5716 = vmatprep.subr.mxu0 %v5205_v2 }
 0xa38   : > { %5717 = vmatpush3.msra.mxu0 %v5205_v2  ;;  %5754 = vmatprep.subr.mxu1 %v5225_v63 }
 0xa39   : > { %5718 = vmatprep.subr.mxu0 %v5204_v3  ;;  %5755 = vmatpush3.msra.mxu1 %v5225_v63 }
 0xa3a   : > { %5719 = vmatpush3.msra.mxu0 %v5204_v3  ;;  %5756 = vmatprep.subr.mxu1 %v5224_v5 }
 0xa3b   : > { %5723 = vmatprep.subr.mxu0 %v5221_v6  ;;  %5757 = vmatpush3.msra.mxu1 %v5224_v5 }
 0xabc   : > { %v2815_v43 = vpop.xlane.xlu1 %2814 }
 0xabd   : > { %v2819_v44 = vmul.f32 0.015625, %v2815_v43 }
 0xabf   : > { %v6531_v45 = vsub.f32 %v2809_v38, %v2819_v44 }
 0xac0   : > { %v2818_v46 = vpop.xlane.xlu0 %2817 }
 0xac1   : > { %v2820_v47 = vmul.f32 0.015625, %v2818_v46  ;;  %v2823_v48 = vmul.f32 %v6531_v45, %v6531_v45 }
 0xac3   : > { %v6535_v49 = vsub.f32 %v2810_v41, %v2820_v47  ;;  %v2825_v50 = vsel %vm677_vm1, %v2823_v48, 0.0 }
 0xac4   : > { %2826 = vadd.xlane.f32.xlu1 %v2825_v50 }
 0xac5   : > { %v2824_v51 = vmul.f32 %v6535_v49, %v6535_v49 }
 0xac7   : > { %v2828_v52 = vsel %vm677_vm1, %v2824_v51, 0.0 }
 0xac8   : > { %2829 = vadd.xlane.f32.xlu0 %v2828_v52 }
 0xb4d   : > { %v2827_v7 = vpop.xlane.xlu1 %2826 }
 0xb4e   : > { %v2831_v9 = vmul.f32 0.015625, %v2827_v7 }
 0xb50   : > { %v2833_v11 = vadd.f32 1e-05, %v2831_v9 }
 0xb51   : > { %v2830_v13 = vpop.xlane.xlu0 %2829 }
 0xb52   : > { %5889 = vrsqrt.f32 %v2833_v11  ;;  %v2832_v14 = vmul.f32 0.015625, %v2830_v13 }
 0xb54   : > { %v2834_v16 = vadd.f32 1e-05, %v2832_v14 }
 0xb56   : > { %5891 = vrsqrt.f32 %v2834_v16 }
 0xb5f   : > { %v5890_v58 = vpop.eup %5889 }
 0xb60   : > { %v2837_v18 = vmul.f32 %v5890_v58, %v6531_v45 }
 0xb62   : > { %v2845_v21 = vmul.f32 %v5202_v17, %v2837_v18 }
 0xb63   : > { %v5892_v22 = vpop.eup %5891 }
 0xb64   : > { %v2838_v23 = vmul.f32 %v5892_v22, %v6535_v49  ;;  %v6600_v24 = vadd.f32 %v5203_v20, %v2845_v21 }
 0xb66   : > { %v2846_v27 = vmul.f32 %v5202_v17, %v2838_v23  ;;  %5720 = vmatprep.mubr.msk.f32.mxu0 %vm677_vm1, %v6600_v24  ;;  %5758 = vmatprep.mubr.msk.f32.mxu1 %vm677_vm1, %v6600_v24 }
 0xb68   : > { %v6606_v28 = vadd.f32 %v5203_v20, %v2846_v27 }
 0xb6a   : > { %5721 = vmatmul.mubr.msk.f32.vlgmr.msra.gmra.mxu0 %vm677_vm1, %v6606_v28  ;;  %5759 = vmatmul.mubr.msk.f32.vlgmr.msra.gmra.mxu1 %vm677_vm1, %v6606_v28 }
 0xb6b   : > { %5724 = vmatpush3.msra.mxu0 %v5221_v6  ;;  %5739 = vmatprep.mubr.msk.f32.mxu0 %vm677_vm1, %v6600_v24 }
 0xb6c   : > { %5725 = vmatprep.subr.mxu0 %v5220_v29 }
 0xb6d   : > { %5726 = vmatpush3.msra.mxu0 %v5220_v29 }
 0xb6e   : > { %5727 = vmatprep.subr.mxu0 %v5219_v30 }
 0xb6f   : > { %5728 = vmatpush3.msra.mxu0 %v5219_v30 }
 0xb70   : > { %5729 = vmatprep.subr.mxu0 %v5218_v31 }
 0xb71   : > { %5730 = vmatpush3.msra.mxu0 %v5218_v31 }
 0xb72   : > { %5731 = vmatprep.subr.mxu0 %v5217_v32 }
 0xb73   : > { %5732 = vmatpush3.msra.mxu0 %v5217_v32 }
 0xb74   : > { %5733 = vmatprep.subr.mxu0 %v5216_v33 }
 0xb75   : > { %5734 = vmatpush3.msra.mxu0 %v5216_v33 }
 0xb76   : > { %5735 = vmatprep.subr.mxu0 %v5215_v34 }
 0xb77   : > { %5736 = vmatpush3.msra.mxu0 %v5215_v34 }
 0xb78   : > { %5737 = vmatprep.subr.mxu0 %v5214_v35 }
 0xb79   : > { %5738 = vmatpush3.msra.mxu0 %v5214_v35 }
 0xb7a   : > { %5740 = vmatmul.mubr.msk.f32.vlgmr.msra.gmra.mxu0 %vm677_vm1, %v6606_v28 }
 0xc2a   : > { %v5722_v36 = vpop.f32.mrf.mxu0 }
 0xc2c   : > { %v2936_v37 = vpop.f32.mrf.mxu0 }
 0xc2d   : > { %5765 = vmatprep.mubr.msk.f32.mxu0 %vm582_vm0, %v2936_v37 }
 0xc3a   : > { %v5741_v38 = vpop.f32.mrf.mxu0 }
 0xc3b   : > { %3137 = vrot.lane.b32.xlu1 %v5741_v38, %s5945_s2  ;;  %3131 = vrot.lane.b32.xlu0 %v5741_v38, %s7052_s25 }
 0xc3c   : > { %v3020_v39 = vpop.f32.mrf.mxu0 }
 0xc3f   : > { %3143 = vrot.lane.b32.xlu1 %v5741_v38, %s7053_s1  ;;  %3141 = vrot.lane.b32.xlu0 %v3020_v39, %s7053_s1 }
 0xc43   : > { %3115 = vrot.lane.b32.xlu0 %v2936_v37, %s7052_s25  ;;  %3129 = vrot.lane.b32.xlu1 %v3020_v39, %s7052_s25 }
 0xc47   : > { %3119 = vrot.lane.b32.xlu0 %v2936_v37, %s5945_s2  ;;  %3135 = vrot.lane.b32.xlu1 %v3020_v39, %s5945_s2 }
 0xc4b   : > { %3123 = vrot.lane.b32.xlu0 %v2936_v37, %s7053_s1  ;;  %3117 = vrot.lane.b32.xlu1 %v5722_v36, %s7052_s25  ;;  %v5760_v37 = vpop.f32.mrf.mxu1 }
 0xc4f   : > { %3121 = vrot.lane.b32.xlu1 %v5722_v36, %s5945_s2 }
 0xc53   : > { %3125 = vrot.lane.b32.xlu1 %v5722_v36, %s7053_s1 }
 0xc69   : > { %3167 = vxpose.xlu0.b32.start [1/2] (short) (narrow) %v3020_v39, 16 }
 0xc6d   : > { %3168 = vxpose.xlu0.b32.end [2/2] (short) (narrow) %v5741_v38, 16  ;;  %v3104_v38 = vpop.f32.mrf.mxu1 }
 0xcad   : > { %v3138_v40 = vpop.permute.xlu1 %3137  ;;  %v3132_v43 = vpop.permute.xlu0 %3131 }
 0xcb1   : > { %v3144_v41 = vpop.permute.xlu1 %3143  ;;  %v3142_v45 = vpop.permute.xlu0 %3141 }
 0xcb5   : > { %v3130_v42 = vpop.permute.xlu1 %3129  ;;  %v3116_v46 = vpop.permute.xlu0 %3115 }
 0xcb6   : > { %3199 = vxpose.xlu1.b32.start [1/2] (short) (narrow) %v3130_v42, 16 }
 0xcb9   : > { %v3136_v44 = vpop.permute.xlu1 %3135  ;;  %v3120_v47 = vpop.permute.xlu0 %3119 }
 0xcba   : > { %3200 = vxpose.xlu1.b32.end [2/2] (short) (narrow) %v3132_v43, 16  ;;  %3231 = vxpose.xlu0.b32.start [1/2] (short) (narrow) %v3136_v44, 16 }
 0xcbd   : > { %v3124_v48 = vpop.permute.xlu0 %3123  ;;  %v3118_v51 = vpop.permute.xlu1 %3117 }
 0xcbe   : > { %3232 = vxpose.xlu0.b32.end [2/2] (short) (narrow) %v3138_v40, 16 }
 0xcc1   : > { %v3122_v52 = vpop.permute.xlu1 %3121 }
 0xcc2   : > { %3263 = vxpose.xlu0.b32.start [1/2] (short) (narrow) %v3142_v45, 16 }
 0xcc5   : > { %v3126_v53 = vpop.permute.xlu1 %3125 }
 0xcc6   : > { %3264 = vxpose.xlu0.b32.end [2/2] (short) (narrow) %v3144_v41, 16 }
 0xce5   : > { %v3183_v49 = vpop.trf.xlu0 }
 0xce9   : > { %v3184_v50 = vpop.trf.xlu0 }
 0xcea   : > { %5761 = vmatprep.subr.mxu0 %v3184_v50 }
 0xceb   : > { %5762 = vmatpush3.msra.mxu0 %v3184_v50 }
 0xcec   : > { %5763 = vmatprep.subr.mxu0 %v3183_v49 }
 0xced   : > { %5764 = vmatpush3.msra.mxu0 %v3183_v49 }
 0xcee   : > { %5766 = vmatmul.mubr.msk.f32.vlgmr.msra.gmra.mxu0 %vm582_vm0, %v5722_v36 }
 0xcef   : > { %5772 = vmatprep.mubr.msk.f32.mxu0 %vm582_vm0, %v3116_v46 }
 0xd32   : > { %v3215_v54 = vpop.trf.xlu1 }
 0xd36   : > { %v3247_v55 = vpop.trf.xlu0  ;;  %v3216_v56 = vpop.trf.xlu1 }
 0xd37   : > { %5768 = vmatprep.subr.mxu0 %v3216_v56 }
 0xd38   : > { %5769 = vmatpush3.msra.mxu0 %v3216_v56 }
 0xd39   : > { %5770 = vmatprep.subr.mxu0 %v3215_v54 }
 0xd3a   : > { %v3248_v57 = vpop.trf.xlu0  ;;  %5771 = vmatpush3.msra.mxu0 %v3215_v54 }
 0xd3b   : > { %5773 = vmatmul.mubr.msk.f32.vlgmr.msra.gmra.mxu0 %vm582_vm0, %v3118_v51  ;;  %5775 = vmatprep.subr.mxu0 %v3248_v57 }
 0xd3c   : > { %5776 = vmatpush3.msra.mxu0 %v3248_v57  ;;  %5779 = vmatprep.mubr.msk.f32.mxu0 %vm582_vm0, %v3120_v47 }
 0xd3d   : > { %5777 = vmatprep.subr.mxu0 %v3247_v55 }
 0xd3e   : > { %v3279_v60 = vpop.trf.xlu0  ;;  %5778 = vmatpush3.msra.mxu0 %v3247_v55 }
 0xd3f   : > { %5780 = vmatmul.mubr.msk.f32.vlgmr.msra.gmra.mxu0 %vm582_vm0, %v3122_v52 }
 0xd40   : > { %5786 = vmatprep.mubr.msk.f32.mxu0 %vm582_vm0, %v3124_v48 }
 0xd42   : > { %v3280_v61 = vpop.trf.xlu0 }
 0xd43   : > { %5782 = vmatprep.subr.mxu0 %v3280_v61 }
 0xd44   : > { %5783 = vmatpush3.msra.mxu0 %v3280_v61 }
 0xd45   : > { %5784 = vmatprep.subr.mxu0 %v3279_v60 }
 0xd46   : > { %5785 = vmatpush3.msra.mxu0 %v3279_v60 }
 0xd47   : > { %5787 = vmatmul.mubr.msk.f32.vlgmr.msra.gmra.mxu0 %vm582_vm0, %v3126_v53 }
 0xdae   : > { %v5767_v62 = vpop.f32.mrf.mxu0 }
 0xdaf   : > { %v3612_v1 = vmul.f32 0.25, %v5767_v62 }
 0xdb0   : > { %v3365_v26 = vpop.f32.mrf.mxu0 }
 0xdb1   : > { %v3611_v25 = vmul.f32 0.25, %v3365_v26  ;;  %v3620_v0 = vsel %vm668_vm2, %v3612_v1, -1e+30 }
 0xdb2   : > { %v3630_v2 = vsel %vm582_vm0, %v3620_v0, -inf }
 0xdb3   : > { %3631 = vmax.xlane.f32.xlu1 %v3630_v2  ;;  %v3619_v63 = vsel %vm668_vm2, %v3611_v25, -1e+30 }
 0xdb4   : > { %v3627_v3 = vsel %vm582_vm0, %v3619_v63, -inf }
 0xdb7   : > { %3628 = vmax.xlane.f32.xlu1 %v3627_v3 }
 0xdfb   : > { %v5774_v5 = vpop.f32.mrf.mxu0 }
 0xdfc   : > { %v3614_v6 = vmul.f32 0.25, %v5774_v5 }
 0xdfd   : > { %v3444_v7 = vpop.f32.mrf.mxu0 }
 0xdfe   : > { %v3613_v9 = vmul.f32 0.25, %v3444_v7  ;;  %v3622_v11 = vsel %vm668_vm2, %v3614_v6, -1e+30 }
 0xdff   : > { %v5781_v13 = vpop.f32.mrf.mxu0  ;;  %v3636_v14 = vsel %vm582_vm0, %v3622_v11, -inf }
 0xe00   : > { %v3616_v16 = vmul.f32 0.25, %v5781_v13  ;;  %3637 = vmax.xlane.f32.xlu0 %v3636_v14  ;;  %v3621_v58 = vsel %vm668_vm2, %v3613_v9, -1e+30 }
 0xe01   : > { %v3523_v17 = vpop.f32.mrf.mxu0  ;;  %v3633_v18 = vsel %vm582_vm0, %v3621_v58, -inf }
 0xe02   : > { %v3615_v20 = vmul.f32 0.25, %v3523_v17  ;;  %3634 = vmax.xlane.f32.xlu1 %v3633_v18  ;;  %v3624_v21 = vsel %vm668_vm2, %v3616_v16, -1e+30 }
 0xe03   : > { %v3642_v22 = vsel %vm582_vm0, %v3624_v21, -inf }
 0xe04   : > { %v3623_v23 = vsel %vm668_vm2, %v3615_v20, -1e+30 }
 0xe05   : > { %v3639_v31 = vsel %vm582_vm0, %v3623_v23, -inf }
 0xe06   : > { %3643 = vmax.xlane.f32.xlu1 %v3642_v22 }
 0xe07   : > { %v5788_v27 = vpop.f32.mrf.mxu0 }
 0xe08   : > { %v3618_v29 = vmul.f32 0.25, %v5788_v27 }
 0xe09   : > { %v3602_v30 = vpop.f32.mrf.mxu0 }
 0xe0a   : > { %v3626_v32 = vsel %vm668_vm2, %v3618_v29, -1e+30  ;;  %v3617_v33 = vmul.f32 0.25, %v3602_v30  ;;  %3640 = vmax.xlane.f32.xlu1 %v3639_v31 }
 0xe0b   : > { %v3648_v34 = vsel %vm582_vm0, %v3626_v32, -inf }
 0xe0c   : > { %v3625_v35 = vsel %vm668_vm2, %v3617_v33, -1e+30  ;;  %3649 = vmax.xlane.f32.xlu0 %v3648_v34 }
 0xe0d   : > { %v3645_v36 = vsel %vm582_vm0, %v3625_v35, -inf }
 0xe10   : > { %3646 = vmax.xlane.f32.xlu0 %v3645_v36 }
 0xe26   : > { %3151 = vrot.lane.b32.xlu0 %v5760_v37, %s7052_s25 }
 0xe2a   : > { %3161 = vrot.lane.b32.xlu0 %v3104_v38, %s7053_s1 }
 0xe2e   : > { %3163 = vrot.lane.b32.xlu0 %v5760_v37, %s7053_s1 }
 0xe3c   : > { %v3632_v39 = vpop.xlane.xlu1 %3631 }
 0xe3d   : > { %v3652_v40 = vsub.f32 %v3620_v0, %v3632_v39  ;;  %3715 = vxpose.xlu1.b32.start [1/2] (short) (narrow) %v3104_v38, 16 }
 0xe3f   : > { %v3661_v41 = vmul.f32 1.442695, %v3652_v40 }
 0xe40   : > { %v3629_v43 = vpop.xlane.xlu1 %3628 }
 0xe41   : > { %5893 = vpow2.f32 %v3661_v41  ;;  %3716 = vxpose.xlu1.b32.end [2/2] (short) (narrow) %v5760_v37, 16  ;;  %v3651_v44 = vsub.f32 %v3619_v63, %v3629_v43 }
 0xe43   : > { %v3659_v45 = vmul.f32 1.442695, %v3651_v44 }
 0xe45   : > { %5895 = vpow2.f32 %v3659_v45 }
 0xe4e   : > { %v6684_v59 = vpop.eup %5893 }
 0xe4f   : > { %v3678_v42 = vsel %vm582_vm0, %v6684_v59, 0.0 }
 0xe50   : > { %3679 = vadd.xlane.f32.xlu0 %v3678_v42 }
 0xe52   : > { %v6691_v46 = vpop.eup %5895 }
 0xe53   : > { %v3675_v49 = vsel %vm582_vm0, %v6691_v46, 0.0 }
 0xe5f   : > { %3149 = vrot.lane.b32.xlu1 %v3104_v38, %s7052_s25 }
 0xe63   : > { %3155 = vrot.lane.b32.xlu1 %v3104_v38, %s5945_s2 }
 0xe67   : > { %3157 = vrot.lane.b32.xlu1 %v5760_v37, %s5945_s2 }
 0xe89   : > { %v3638_v47 = vpop.xlane.xlu0 %3637 }
 0xe8a   : > { %v3654_v48 = vsub.f32 %v3622_v11, %v3638_v47 }
 0xe8b   : > { %3676 = vadd.xlane.f32.xlu1 %v3675_v49  ;;  %v3635_v50 = vpop.xlane.xlu1 %3634 }
 0xe8c   : > { %v3665_v51 = vmul.f32 1.442695, %v3654_v48  ;;  %v3653_v52 = vsub.f32 %v3621_v58, %v3635_v50 }
 0xe8e   : > { %5897 = vpow2.f32 %v3665_v51  ;;  %v3663_v53 = vmul.f32 1.442695, %v3653_v52 }
 0xe8f   : > { %v3644_v54 = vpop.xlane.xlu1 %3643 }
 0xe90   : > { %5899 = vpow2.f32 %v3663_v53  ;;  %v3656_v55 = vsub.f32 %v3624_v21, %v3644_v54 }
 0xe92   : > { %v3669_v56 = vmul.f32 1.442695, %v3656_v55 }
 0xe93   : > { %v3641_v57 = vpop.xlane.xlu1 %3640 }
 0xe94   : > { %5901 = vpow2.f32 %v3669_v56  ;;  %v3655_v60 = vsub.f32 %v3623_v23, %v3641_v57 }
 0xe95   : > { %v3650_v61 = vpop.xlane.xlu0 %3649 }
 0xe96   : > { %v3667_v62 = vmul.f32 1.442695, %v3655_v60  ;;  %v3658_v1 = vsub.f32 %v3626_v32, %v3650_v61 }
 0xe98   : > { %5903 = vpow2.f32 %v3667_v62  ;;  %v3673_v26 = vmul.f32 1.442695, %v3658_v1 }
 0xe99   : > { %v3647_v25 = vpop.xlane.xlu0 %3646 }
 0xe9a   : > { %5905 = vpow2.f32 %v3673_v26  ;;  %v3657_v0 = vsub.f32 %v3625_v35, %v3647_v25 }
 0xe9b   : > { %v5898_v2 = vpop.eup %5897 }
 0xe9c   : > { %v3671_v63 = vmul.f32 1.442695, %v3657_v0  ;;  %v3684_v3 = vsel %vm582_vm0, %v5898_v2, 0.0 }
 0xe9d   : > { %v5900_v5 = vpop.eup %5899  ;;  %3685 = vadd.xlane.f32.xlu0 %v3684_v3  ;;  %v3152_v20 = vpop.permute.xlu0 %3151 }
 0xe9e   : > { %5907 = vpow2.f32 %v3671_v63  ;;  %v3681_v6 = vsel %vm582_vm0, %v5900_v5, 0.0 }
 0xea1   : > { %v5902_v7 = vpop.eup %5901  ;;  %3682 = vadd.xlane.f32.xlu0 %v3681_v6  ;;  %v3162_v22 = vpop.permute.xlu0 %3161 }
 0xea2   : > { %v3690_v9 = vsel %vm582_vm0, %v5902_v7, 0.0 }
 0xea3   : > { %3691 = vadd.xlane.f32.xlu1 %v3690_v9 }
 0xea5   : > { %v5904_v11 = vpop.eup %5903  ;;  %v3164_v27 = vpop.permute.xlu0 %3163 }
 0xea6   : > { %v3687_v13 = vsel %vm582_vm0, %v5904_v11, 0.0 }
 0xea7   : > { %v5906_v14 = vpop.eup %5905  ;;  %3688 = vadd.xlane.f32.xlu1 %v3687_v13 }
 0xea8   : > { %v3696_v16 = vsel %vm582_vm0, %v5906_v14, 0.0 }
 0xea9   : > { %3697 = vadd.xlane.f32.xlu0 %v3696_v16 }
 0xeab   : > { %v6700_v58 = vpop.eup %5907 }
 0xeac   : > { %v3693_v17 = vsel %vm582_vm0, %v6700_v58, 0.0 }
 0xead   : > { %3694 = vadd.xlane.f32.xlu0 %v3693_v17 }
 0xeb9   : > { %v3731_v18 = vpop.trf.xlu1 }
 0xeba   : > { %5793 = vmatprep.mubr.msk.f32.mxu1 %vm582_vm0, %v3731_v18 }
 0xebd   : > { %v3732_v21 = vpop.trf.xlu1 }
 0xed1   : > { %v3150_v23 = vpop.permute.xlu1 %3149 }
 0xed5   : > { %v3156_v29 = vpop.permute.xlu1 %3155 }
 0xed9   : > { %v3680_v30 = vpop.xlane.xlu0 %3679  ;;  %v3158_v31 = vpop.permute.xlu1 %3157 }
 0xeda   : > { %5909 = vrcp.f32 %v3680_v30  ;;  %3747 = vxpose.xlu0.b32.start [1/2] (short) (narrow) %v3150_v23, 16  ;;  %3779 = vxpose.xlu1.b32.start [1/2] (short) (narrow) %v3156_v29, 16 }
 0xede   : > { %3748 = vxpose.xlu0.b32.end [2/2] (short) (narrow) %v3152_v20, 16  ;;  %3780 = vxpose.xlu1.b32.end [2/2] (short) (narrow) %v3158_v31, 16 }
 0xee2   : > { %3811 = vxpose.xlu0.b32.start [1/2] (short) (narrow) %v3162_v22, 16 }
 0xee6   : > { %3812 = vxpose.xlu0.b32.end [2/2] (short) (narrow) %v3164_v27, 16 }
 0xee7   : > { %v5910_v32 = vpop.eup %5909 }
 0xee8   : > { %v3708_v33 = vmul.f32 %v5910_v32, %v6684_v59 }
 0xeea   : > { %5789 = vmatprep.subr.msk.mxu1 %vm582_vm0, %v3708_v33 }
 0xeeb   : > { %5790 = vmatpush3.xpose.msk.msra.mxu1 %vm582_vm0, %v3708_v33 }
 0xf14   : > { %v3677_v34 = vpop.xlane.xlu1 %3676 }
 0xf15   : > { %5911 = vrcp.f32 %v3677_v34 }
 0xf22   : > { %v5912_v35 = vpop.eup %5911 }
 0xf23   : > { %v3707_v36 = vmul.f32 %v5912_v35, %v6691_v46 }
 0xf25   : > { %5791 = vmatprep.subr.msk.mxu1 %vm582_vm0, %v3707_v36 }
 0xf26   : > { %v3686_v37 = vpop.xlane.xlu0 %3685  ;;  %5792 = vmatpush3.xpose.msk.msra.mxu1 %vm582_vm0, %v3707_v36 }
 0xf27   : > { %5913 = vrcp.f32 %v3686_v37  ;;  %v5269_v37 = vld [vmem:[%s7020_s6 + $0x78] sm:$0xff] }
 0xf29   : > { %5794 = vmatmul.mubr.msk.f32.vlgmr.msra.gmra.mxu1 %vm582_vm0, %v3732_v21 }
 0xf2a   : > { %v3683_v38 = vpop.xlane.xlu0 %3682 }
 0xf2b   : > { %5915 = vrcp.f32 %v3683_v38  ;;  %v5268_v38 = vld [vmem:[%s7020_s6 + $0x70] sm:$0xff] }
 0xf2c   : > { %v3692_v39 = vpop.xlane.xlu1 %3691 }
 0xf2d   : > { %5917 = vrcp.f32 %v3692_v39 }
 0xf30   : > { %v3689_v40 = vpop.xlane.xlu1 %3688 }
 0xf31   : > { %5919 = vrcp.f32 %v3689_v40 }
 0xf32   : > { %v3698_v41 = vpop.xlane.xlu0 %3697 }
 0xf33   : > { %5921 = vrcp.f32 %v3698_v41 }
 0xf34   : > { %v5914_v59 = vpop.eup %5913 }
 0xf35   : > { %v3710_v42 = vmul.f32 %v5914_v59, %v5898_v2 }
 0xf36   : > { %v3695_v51 = vpop.xlane.xlu0 %3694 }
 0xf37   : > { %5796 = vmatprep.subr.msk.mxu0 %vm582_vm0, %v3710_v42  ;;  %5923 = vrcp.f32 %v3695_v51 }
 0xf38   : > { %v5916_v43 = vpop.eup %5915  ;;  %5797 = vmatpush3.xpose.msk.msra.mxu0 %vm582_vm0, %v3710_v42 }
 0xf39   : > { %v3709_v44 = vmul.f32 %v5916_v43, %v5900_v5 }
 0xf3a   : > { %v5918_v45 = vpop.eup %5917 }
 0xf3b   : > { %5798 = vmatprep.subr.msk.mxu0 %vm582_vm0, %v3709_v44  ;;  %v3712_v46 = vmul.f32 %v5918_v45, %v5902_v7 }
 0xf3c   : > { %5799 = vmatpush3.xpose.msk.msra.mxu0 %vm582_vm0, %v3709_v44 }
 0xf3d   : > { %5803 = vmatprep.subr.msk.mxu1 %vm582_vm0, %v3712_v46 }
 0xf3e   : > { %v5920_v47 = vpop.eup %5919  ;;  %5804 = vmatpush3.xpose.msk.msra.mxu1 %vm582_vm0, %v3712_v46 }
 0xf3f   : > { %v3711_v48 = vmul.f32 %v5920_v47, %v5904_v11 }
 0xf40   : > { %v5922_v49 = vpop.eup %5921 }
 0xf41   : > { %5805 = vmatprep.subr.msk.mxu1 %vm582_vm0, %v3711_v48  ;;  %v3714_v50 = vmul.f32 %v5922_v49, %v5906_v14 }
 0xf42   : > { %5806 = vmatpush3.xpose.msk.msra.mxu1 %vm582_vm0, %v3711_v48 }
 0xf43   : > { %5810 = vmatprep.subr.msk.mxu0 %vm582_vm0, %v3714_v50  ;;  %5817 = vmatprep.subr.mxu1 %v5269_v37 }
 0xf44   : > { %v5924_v54 = vpop.eup %5923 }
 0xf45   : > { %v3713_v57 = vmul.f32 %v5924_v54, %v6700_v58 }
 0xf56   : > { %v3763_v52 = vpop.trf.xlu0  ;;  %v3795_v53 = vpop.trf.xlu1 }
 0xf57   : > { %5800 = vmatprep.mubr.msk.f32.mxu0 %vm582_vm0, %v3763_v52  ;;  %5807 = vmatprep.mubr.msk.f32.mxu1 %vm582_vm0, %v3795_v53 }
 0xf5a   : > { %v3764_v55 = vpop.trf.xlu0  ;;  %v3796_v56 = vpop.trf.xlu1 }
 0xf5b   : > { %5801 = vmatmul.mubr.msk.f32.vlgmr.msra.gmra.mxu0 %vm582_vm0, %v3764_v55  ;;  %5808 = vmatmul.mubr.msk.f32.vlgmr.msra.gmra.mxu1 %vm582_vm0, %v3796_v56 }
 0xf5c   : > { %5811 = vmatpush3.xpose.msk.msra.mxu0 %vm582_vm0, %v3714_v50  ;;  %5818 = vmatpush3.msra.mxu1 %v5269_v37 }
 0xf5d   : > { %5812 = vmatprep.subr.msk.mxu0 %vm582_vm0, %v3713_v57  ;;  %5819 = vmatprep.subr.mxu1 %v5268_v38 }
 0xf5e   : > { %v3827_v60 = vpop.trf.xlu0  ;;  %5820 = vmatpush3.msra.mxu1 %v5268_v38 }
 0xf5f   : > { %5814 = vmatprep.mubr.msk.f32.mxu0 %vm582_vm0, %v3827_v60  ;;  %v5267_v60 = vld [vmem:[%s7020_s6 + $0x68] sm:$0xff] }
 0xf60   : > { %5813 = vmatpush3.xpose.msk.msra.mxu0 %vm582_vm0, %v3713_v57  ;;  %5821 = vmatprep.subr.mxu1 %v5267_v60 }
 0xf61   : > { %5822 = vmatpush3.msra.mxu1 %v5267_v60 }
 0xf62   : > { %v3828_v61 = vpop.trf.xlu0 }
 0xf63   : > { %5815 = vmatmul.mubr.msk.f32.vlgmr.msra.gmra.mxu0 %vm582_vm0, %v3828_v61  ;;  %v5266_v61 = vld [vmem:[%s7020_s6 + $0x60] sm:$0xff] }
 0xf64   : > { %4867 = vmatprep.mubr.f32.mxu0 %v5953_v19  ;;  %5823 = vmatprep.subr.mxu1 %v5266_v61 }
 0xf65   : > { %5824 = vmatpush3.msra.mxu1 %v5266_v61 }
 0xfe9   : > { %v5795_v62 = vpop.f32.mrf.mxu1 }
 0xfeb   : > { %v3921_v1 = vpop.f32.mrf.mxu1 }
 0xfec   : > { %4191 = vxpose.xlu1.b32.start [1/2] (short) (narrow) %v3921_v1, 16 }
 0xff0   : > { %4192 = vxpose.xlu1.b32.end [2/2] (short) (narrow) %v5795_v62, 16 }
0x101b   : > { %v5802_v26 = vpop.f32.mrf.mxu0  ;;  %v5809_v25 = vpop.f32.mrf.mxu1 }
0x101d   : > { %v4008_v0 = vpop.f32.mrf.mxu0  ;;  %v4095_v2 = vpop.f32.mrf.mxu1 }
0x101e   : > { %4223 = vxpose.xlu0.b32.start [1/2] (short) (narrow) %v4008_v0, 16  ;;  %4255 = vxpose.xlu1.b32.start [1/2] (short) (narrow) %v4095_v2, 16 }
0x1022   : > { %4224 = vxpose.xlu0.b32.end [2/2] (short) (narrow) %v5802_v26, 16  ;;  %4256 = vxpose.xlu1.b32.end [2/2] (short) (narrow) %v5809_v25, 16 }
0x1023   : > { %v5816_v63 = vpop.f32.mrf.mxu0 }
0x1025   : > { %v4182_v3 = vpop.f32.mrf.mxu0 }
0x1026   : > { %4287 = vxpose.xlu0.b32.start [1/2] (short) (narrow) %v4182_v3, 16 }
0x102a   : > { %4288 = vxpose.xlu0.b32.end [2/2] (short) (narrow) %v5816_v63, 16 }
0x1068   : > { %v4207_v5 = vpop.trf.xlu1 }
0x106c   : > { %v4208_v6 = vpop.trf.xlu1 }
0x109a   : > { %v4239_v7 = vpop.trf.xlu0  ;;  %v4271_v9 = vpop.trf.xlu1 }
0x109b   : > { %v4319_v13 = vcombine.low %v4207_v5, %v4271_v9  ;;  %v4320_v14 = vcombine.high %v4207_v5, %v4271_v9 }
0x109d   : > { %v4327_v20 = vrot.slane %v4319_v13, %v6269_v8  ;;  %v4334_v21 = vrot.slane %v4320_v14, %v6269_v8 }
0x109e   : > { %v4240_v11 = vpop.trf.xlu0  ;;  %v4272_v58 = vpop.trf.xlu1 }
0x109f   : > { %v4387_v27 = vcombine.low %v4208_v6, %v4272_v58  ;;  %v4388_v29 = vcombine.high %v4208_v6, %v4272_v58 }
0x10a1   : > { %v4395_v42 = vrot.slane %v4387_v27, %v6269_v8  ;;  %v4402_v43 = vrot.slane %v4388_v29, %v6269_v8 }
0x10a2   : > { %v4303_v16 = vpop.trf.xlu0 }
0x10a3   : > { %v4335_v17 = vcombine.low %v4239_v7, %v4303_v16  ;;  %v4336_v18 = vcombine.high %v4239_v7, %v4303_v16  ;;  %v5264_v16 = vld [vmem:[%s7020_s6 + $0x50] sm:$0xff] }
0x10a5   : > { %v4343_v22 = vrot.slane %v4335_v17, %v6269_v8  ;;  %v4350_v23 = vrot.slane %v4336_v18, %v6269_v8 }
0x10a6   : > { %v4304_v30 = vpop.trf.xlu0 }
0x10a7   : > { %v4351_v31 = vcombine.low %v4327_v20, %v4343_v22  ;;  %v4352_v32 = vcombine.high %v4327_v20, %v4343_v22  ;;  %v4367_v33 = vcombine.low %v4334_v21, %v4350_v23  ;;  %v4368_v34 = vcombine.high %v4334_v21, %v4350_v23 }
0x10a8   : > { %v4403_v35 = vcombine.low %v4240_v11, %v4304_v30  ;;  %v4404_v36 = vcombine.high %v4240_v11, %v4304_v30  ;;  %v5265_v11 = vld [vmem:[%s7020_s6 + $0x58] sm:$0xff] }
0x10a9   : > { %v4359_v39 = vrot.slane %v4351_v31, %v6272_v15  ;;  %v4366_v40 = vrot.slane %v4352_v32, %v6272_v15  ;;  %v4375_v41 = vrot.slane %v4367_v33, %v6272_v15  ;;  %v4382_v59 = vrot.slane %v4368_v34, %v6272_v15  ;;  %5825 = vmatprep.subr.mxu1 %v5265_v11  ;;  %v5263_v31 = vld [vmem:[%s7020_s6 + $0x48] sm:$0xff] }
0x10aa   : > { %v4411_v44 = vrot.slane %v4403_v35, %v6269_v8  ;;  %v4418_v45 = vrot.slane %v4404_v36, %v6269_v8  ;;  %5826 = vmatpush3.msra.mxu1 %v5265_v11  ;;  %v5292_v11 = vld [vmem:[%s7024_s10 + $0xf0] sm:$0xff] }
0x10ab   : > { %v4455_v46 = vcombine.low %v4359_v39, %v4366_v40  ;;  %v5258_v47 = vcombine.high %v4359_v39, %v4366_v40  ;;  %v4471_v48 = vcombine.low %v4375_v41, %v4382_v59  ;;  %v5259_v49 = vcombine.high %v4375_v41, %v4382_v59  ;;  %5827 = vmatprep.subr.mxu1 %v5264_v16 }
0x10ac   : > { %v4419_v50 = vcombine.low %v4395_v42, %v4411_v44  ;;  %v4420_v51 = vcombine.high %v4395_v42, %v4411_v44  ;;  %v4435_v52 = vcombine.low %v4402_v43, %v4418_v45  ;;  %v4436_v53 = vcombine.high %v4402_v43, %v4418_v45  ;;  %5828 = vmatpush3.msra.mxu1 %v5264_v16  ;;  %v5289_v16 = vld [vmem:[%s7024_s10 + $0xd8] sm:$0xff] }
0x10ad   : > { %v4462_v54 = vrot.slane %v4455_v46, %v6269_v8  ;;  %v4470_v55 = vrot.slane %v5258_v47, %v6269_v8  ;;  %v4478_v56 = vrot.slane %v4471_v48, %v6269_v8  ;;  %v4486_v57 = vrot.slane %v5259_v49, %v6269_v8  ;;  %5829 = vmatprep.subr.mxu1 %v5263_v31 }
0x10ae   : > { %v4427_v62 = vrot.slane %v4419_v50, %v6272_v15  ;;  %v4434_v1 = vrot.slane %v4420_v51, %v6272_v15  ;;  %v4443_v26 = vrot.slane %v4435_v52, %v6272_v15  ;;  %v4450_v25 = vrot.slane %v4436_v53, %v6272_v15  ;;  %5830 = vmatpush3.msra.mxu1 %v5263_v31  ;;  %v5278_v31 = vld [vmem:[%s7024_s10 + $0x80] sm:$0xff] }
0x10af   : > { %v4487_v0 = vcombine.low %v4462_v54, %v4470_v55  ;;  %v4503_v2 = vcombine.low %v4478_v56, %v4486_v57  ;;  %v4488_v63 = vcombine.high %v4462_v54, %v4470_v55  ;;  %v4504_v3 = vcombine.high %v4478_v56, %v4486_v57  ;;  %v5271_v54 = vld [vmem:[%s7021_s7 + $0x1] ss:$0 sm:$0xff] }
0x10b0   : > { %v4523_v5 = vcombine.low %v4427_v62, %v4434_v1  ;;  %v5260_v6 = vcombine.high %v4427_v62, %v4434_v1  ;;  %v4539_v7 = vcombine.low %v4443_v26, %v4450_v25  ;;  %v5261_v9 = vcombine.high %v4443_v26, %v4450_v25 }
0x10b1   : > { %v4495_v13 = vrot.slane %v4487_v0, %v6272_v15  ;;  %v4511_v14 = vrot.slane %v4503_v2, %v6272_v15  ;;  %v4502_v22 = vrot.slane %v4488_v63, %v6272_v15  ;;  %v4518_v23 = vrot.slane %v4504_v3, %v6272_v15 }
0x10b2   : > { %v4530_v58 = vrot.slane %v4523_v5, %v6269_v8  ;;  %v4538_v17 = vrot.slane %v5260_v6, %v6269_v8  ;;  %v4546_v18 = vrot.slane %v4539_v7, %v6269_v8  ;;  %v4554_v20 = vrot.slane %v5261_v9, %v6269_v8  ;;  %v5262_v8 = vld [vmem:[%s7020_s6 + $0x40] sm:$0xff]  ;;  %v5293_v9 = vld [vmem:[%s7024_s10 + $0xf8] sm:$0xff] }
0x10b3   : > { %v4520_v21 = vcombine.high %v4495_v13, %v4511_v14  ;;  %v4519_v27 = vcombine.low %v4495_v13, %v4511_v14  ;;  %v4521_v34 = vcombine.low %v4502_v22, %v4518_v23  ;;  %5831 = vmatprep.subr.mxu1 %v5262_v8  ;;  %v4522_v39 = vcombine.high %v4502_v22, %v4518_v23  ;;  %v5291_v13 = vld [vmem:[%s7024_s10 + $0xe8] sm:$0xff]  ;;  %v5290_v14 = vld [vmem:[%s7024_s10 + $0xe0] sm:$0xff] }
0x10b4   : > { %v4555_v29 = vcombine.low %v4530_v58, %v4538_v17  ;;  %v4571_v30 = vcombine.low %v4546_v18, %v4554_v20  ;;  %v4556_v35 = vcombine.high %v4530_v58, %v4538_v17  ;;  %v4572_v36 = vcombine.high %v4546_v18, %v4554_v20  ;;  %5832 = vmatpush3.msra.mxu1 %v5262_v8  ;;  %v5288_v58 = vld [vmem:[%s7024_s10 + $0xd0] sm:$0xff]  ;;  %v5287_v17 = vld [vmem:[%s7024_s10 + $0xc8] sm:$0xff]  ;;  %v5286_v18 = vld [vmem:[%s7024_s10 + $0xc0] sm:$0xff] }
0x10b5   : > { %4593 = vrot.lane.b32.xlu1 %v4520_v21, %s7054_s30  ;;  %4819 = vmatprep.subr.mxu0 %v5293_v9  ;;  %v5285_v20 = vld [vmem:[%s7024_s10 + $0xb8] sm:$0xff]  ;;  %v5284_v21 = vld [vmem:[%s7024_s10 + $0xb0] sm:$0xff]  ;;  %v5283_v22 = vld [vmem:[%s7024_s10 + $0xa8] sm:$0xff] }
0x10b6   : > { %v4563_v32 = vrot.slane %v4555_v29, %v6272_v15  ;;  %v4579_v33 = vrot.slane %v4571_v30, %v6272_v15  ;;  %v4570_v40 = vrot.slane %v4556_v35, %v6272_v15  ;;  %v4586_v41 = vrot.slane %v4572_v36, %v6272_v15  ;;  %4820 = vmatpush1.msra.mxu0 %v5292_v11  ;;  %v5282_v23 = vld [vmem:[%s7024_s10 + $0xa0] sm:$0xff]  ;;  %v5280_v29 = vld [vmem:[%s7024_s10 + $0x90] sm:$0xff]  ;;  %v5279_v30 = vld [vmem:[%s7024_s10 + $0x88] sm:$0xff] }
0x10b7   : > { %4821 = vmatprep.subr.mxu0 %v5291_v13  ;;  %v5328_v8 = vld [vmem:[%s7026_s12 + $0x1f8] sm:$0xff]  ;;  %v5326_v35 = vld [vmem:[%s7026_s12 + $0x1e8] sm:$0xff]  ;;  %v5313_v11 = vld [vmem:[%s7026_s12 + $0x180] sm:$0xff] }
0x10b8   : > { %v4588_v37 = vcombine.high %v4563_v32, %v4579_v33  ;;  %v4587_v38 = vcombine.low %v4563_v32, %v4579_v33  ;;  %v4589_v59 = vcombine.low %v4570_v40, %v4586_v41  ;;  %v4590_v42 = vcombine.high %v4570_v40, %v4586_v41  ;;  %4822 = vmatpush1.msra.mxu0 %v5290_v14  ;;  %v5312_v32 = vld [vmem:[%s7026_s12 + $0x178] sm:$0xff]  ;;  %v5327_v33 = vld [vmem:[%s7026_s12 + $0x1f0] sm:$0xff]  ;;  %v5310_v36 = vld [vmem:[%s7026_s12 + $0x168] sm:$0xff] }
0x10b9   : > { %4601 = vrot.lane.b32.xlu1 %v4521_v34, %s7055_s22  ;;  %4823 = vmatprep.subr.mxu0 %v5289_v16  ;;  %v5311_v34 = vld [vmem:[%s7026_s12 + $0x170] sm:$0xff]  ;;  %v5308_v40 = vld [vmem:[%s7026_s12 + $0x158] sm:$0xff]  ;;  %v5298_v9 = vld [vmem:[%s7026_s12 + $0x108] sm:$0xff] }
0x10ba   : > { %4595 = vrot.lane.b32.xlu0 %v4588_v37, %s7054_s30  ;;  %4824 = vmatpush1.msra.mxu0 %v5288_v58  ;;  %v5325_v37 = vld [vmem:[%s7026_s12 + $0x1e0] sm:$0xff]  ;;  %v5323_v41 = vld [vmem:[%s7026_s12 + $0x1d0] sm:$0xff] }
0x10bb   : > { %4825 = vmatprep.subr.mxu0 %v5287_v17  ;;  %5527 = vmatprep.subr.mxu1 %v5328_v8  ;;  %v5297_v13 = vld [vmem:[%s7026_s12 + $0x100] sm:$0xff] }
0x10bc   : > { %4826 = vmatpush1.msra.mxu0 %v5286_v18  ;;  %v5294_v14 = vld [vmem:[%s7025_s11 + $0x2] sm:$0x3] }
0x10bd   : > { %4609 = vrot.lane.b32.xlu1 %v4522_v39, %s7056_s29  ;;  %4827 = vmatprep.subr.mxu0 %v5285_v20  ;;  %v5324_v39 = vld [vmem:[%s7026_s12 + $0x1d8] sm:$0xff]  ;;  %v4790_v16 = vrot.slane %v5294_v14, %v2600_v10  ;;  %v4794_v58 = vrot.slane %v5294_v14, %v2604_v12 }
0x10be   : > { %4828 = vmatpush1.msra.mxu0 %v5284_v21 }
0x10bf   : > { %4829 = vmatprep.subr.mxu0 %v5283_v22 }
0x10c0   : > { %4830 = vmatpush1.msra.mxu0 %v5282_v23 }
0x10c1   : > { %4603 = vrot.lane.b32.xlu1 %v4589_v59, %s7055_s22  ;;  %v5307_v59 = vld [vmem:[%s7026_s12 + $0x150] sm:$0xff] }
0x10c5   : > { %4611 = vrot.lane.b32.xlu1 %v4590_v42, %s7056_s29  ;;  %v5322_v42 = vld [vmem:[%s7026_s12 + $0x1c8] sm:$0xff] }
0x1127   : > { %v4594_v43 = vpop.permute.xlu1 %4593 }
0x1128   : > { %v4615_v45 = vsel %vm582_vm0, %v4519_v27, %v4594_v43  ;;  %v5281_v27 = vld [vmem:[%s7024_s10 + $0x98] sm:$0xff]  ;;  %v5306_v43 = vld [vmem:[%s7026_s12 + $0x148] sm:$0xff] }
0x1129   : > { %4831 = vmatprep.subr.mxu0 %v5281_v27 }
0x112a   : > { %4832 = vmatpush1.msra.mxu0 %v5280_v29 }
0x112b   : > { %v4602_v44 = vpop.permute.xlu1 %4601  ;;  %4833 = vmatprep.subr.mxu0 %v5279_v30 }
0x112c   : > { %v4617_v46 = vsel %vm2431_vm3, %v4615_v45, %v4602_v44  ;;  %v4596_v15 = vpop.permute.xlu0 %4595  ;;  %4834 = vmatpush1.msra.mxu0 %v5278_v31  ;;  %v5321_v44 = vld [vmem:[%s7026_s12 + $0x1c0] sm:$0xff] }
0x112d   : > { %v4616_v50 = vsel %vm582_vm0, %v4587_v38, %v4596_v15  ;;  %v5309_v38 = vld [vmem:[%s7026_s12 + $0x160] sm:$0xff]  ;;  %v5303_v15 = vld [vmem:[%s7026_s12 + $0x130] sm:$0xff] }
0x112e   : > { %v5305_v45 = vld [vmem:[%s7026_s12 + $0x140] sm:$0xff] }
0x112f   : > { %v4610_v47 = vpop.permute.xlu1 %4609 }
0x1130   : > { %v4619_v48 = vsel %vm2434_vm4, %v4617_v46, %v4610_v47  ;;  %v5320_v46 = vld [vmem:[%s7026_s12 + $0x1b8] sm:$0xff] }
0x1131   : > { %5833 = vmatprep.mubr.msk.f32.mxu1 %vm677_vm1, %v4619_v48  ;;  %v5304_v47 = vld [vmem:[%s7026_s12 + $0x138] sm:$0xff]  ;;  %v5319_v48 = vld [vmem:[%s7026_s12 + $0x1b0] sm:$0xff] }
0x1133   : > { %v4604_v49 = vpop.permute.xlu1 %4603 }
0x1134   : > { %v4618_v51 = vsel %vm2431_vm3, %v4616_v50, %v4604_v49  ;;  %v5318_v49 = vld [vmem:[%s7026_s12 + $0x1a8] sm:$0xff] }
0x1135   : > { %v5302_v50 = vld [vmem:[%s7026_s12 + $0x128] sm:$0xff] }
0x1137   : > { %v4612_v52 = vpop.permute.xlu1 %4611 }
0x1138   : > { %v4620_v53 = vsel %vm2434_vm4, %v4618_v51, %v4612_v52  ;;  %v5317_v51 = vld [vmem:[%s7026_s12 + $0x1a0] sm:$0xff] }
0x1139   : > { %5834 = vmatmul.mubr.msk.f32.vlgmr.msra.gmra.mxu1 %vm677_vm1, %v4620_v53  ;;  %v5301_v52 = vld [vmem:[%s7026_s12 + $0x120] sm:$0xff] }
0x113a   : > { %5528 = vmatpush3.msra.mxu1 %v5312_v32 }
0x113b   : > { %5529 = vmatprep.subr.mxu1 %v5327_v33 }
0x113c   : > { %5530 = vmatpush3.msra.mxu1 %v5311_v34 }
0x113d   : > { %5531 = vmatprep.subr.mxu1 %v5326_v35 }
0x113e   : > { %5532 = vmatpush3.msra.mxu1 %v5310_v36 }
0x113f   : > { %5533 = vmatprep.subr.mxu1 %v5325_v37 }
0x1140   : > { %5534 = vmatpush3.msra.mxu1 %v5309_v38 }
0x1141   : > { %5535 = vmatprep.subr.mxu1 %v5324_v39 }
0x1142   : > { %5536 = vmatpush3.msra.mxu1 %v5308_v40 }
0x1143   : > { %5537 = vmatprep.subr.mxu1 %v5323_v41 }
0x1144   : > { %5538 = vmatpush3.msra.mxu1 %v5307_v59 }
0x1145   : > { %5539 = vmatprep.subr.mxu1 %v5322_v42 }
0x1146   : > { %5540 = vmatpush3.msra.mxu1 %v5306_v43 }
0x1147   : > { %5541 = vmatprep.subr.mxu1 %v5321_v44 }
0x1148   : > { %5542 = vmatpush3.msra.mxu1 %v5305_v45 }
0x1149   : > { %5543 = vmatprep.subr.mxu1 %v5320_v46 }
0x114a   : > { %5544 = vmatpush3.msra.mxu1 %v5304_v47 }
0x114b   : > { %5545 = vmatprep.subr.mxu1 %v5319_v48 }
0x114c   : > { %5546 = vmatpush3.msra.mxu1 %v5303_v15 }
0x114d   : > { %5547 = vmatprep.subr.mxu1 %v5318_v49 }
0x114e   : > { %5548 = vmatpush3.msra.mxu1 %v5302_v50 }
0x114f   : > { %5549 = vmatprep.subr.mxu1 %v5317_v51 }
0x1150   : > { %5550 = vmatpush3.msra.mxu1 %v5301_v52 }
0x11f9   : > { %v5835_v55 = vpop.f32.mrf.mxu1 }
0x11fa   : > { %v4716_v56 = vadd.f32 %v5835_v55, %v5271_v54 }
0x11fb   : > { %v4710_v57 = vpop.f32.mrf.mxu1 }
0x11fc   : > { %v4720_v60 = vadd.f32 %v4716_v56, %v6606_v28  ;;  %v4711_v61 = vadd.f32 %v5271_v54, %v4710_v57 }
0x11fe   : > { %v4719_v62 = vadd.f32 %v4711_v61, %v6600_v24  ;;  %v4728_v1 = vsel %vm677_vm1, %v4720_v60, 0.0 }
0x11ff   : > { %4729 = vadd.xlane.f32.xlu1 %v4728_v1 }
0x1200   : > { %v4725_v26 = vsel %vm677_vm1, %v4719_v62, 0.0 }
0x1201   : > { %4726 = vadd.xlane.f32.xlu0 %v4725_v26  ;;  %v5277_v26 = vld [vmem:[%s7023_s9 + $0x1] ss:$0 sm:$0xff] }
0x1288   : > { %v4730_v25 = vpop.xlane.xlu1 %4729 }
0x1289   : > { %v4732_v0 = vmul.f32 0.015625, %v4730_v25 }
0x128a   : > { %v4727_v2 = vpop.xlane.xlu0 %4726 }
0x128b   : > { %v4731_v63 = vmul.f32 0.015625, %v4727_v2  ;;  %v6809_v3 = vsub.f32 %v4720_v60, %v4732_v0 }
0x128d   : > { %v6811_v5 = vsub.f32 %v4719_v62, %v4731_v63  ;;  %v4736_v24 = vmul.f32 %v6809_v3, %v6809_v3  ;;  %v5276_v62 = vld [vmem:[%s7022_s8 + $0x1] ss:$0 sm:$0xff] }
0x128f   : > { %v4735_v28 = vmul.f32 %v6811_v5, %v6811_v5  ;;  %v4740_v7 = vsel %vm677_vm1, %v4736_v24, 0.0  ;;  %v5300_v24 = vld [vmem:[%s7026_s12 + $0x118] sm:$0xff] }
0x1291   : > { %v4737_v6 = vsel %vm677_vm1, %v4735_v28, 0.0 }
0x1292   : > { %4738 = vadd.xlane.f32.xlu0 %v4737_v6 }
0x1296   : > { %4741 = vadd.xlane.f32.xlu0 %v4740_v7  ;;  %v5314_v7 = vld [vmem:[%s7026_s12 + $0x188] sm:$0xff] }
0x131b   : > { %v4739_v53 = vpop.xlane.xlu0 %4738 }
0x131c   : > { %v4743_v54 = vmul.f32 0.015625, %v4739_v53 }
0x131e   : > { %v4745_v55 = vadd.f32 1e-05, %v4743_v54 }
0x131f   : > { %v4742_v56 = vpop.xlane.xlu0 %4741 }
0x1320   : > { %5925 = vrsqrt.f32 %v4745_v55  ;;  %v4744_v57 = vmul.f32 0.015625, %v4742_v56 }
0x1322   : > { %v4746_v60 = vadd.f32 1e-05, %v4744_v57 }
0x1324   : > { %5927 = vrsqrt.f32 %v4746_v60  ;;  %v5333_v60 = vld [vmem:[%s7028_s14 + $0x1] ss:$0 sm:$0xff] }
0x132d   : > { %v5926_v61 = vpop.eup %5925 }
0x132e   : > { %v4749_v1 = vmul.f32 %v5926_v61, %v6811_v5  ;;  %v5316_v5 = vld [vmem:[%s7026_s12 + $0x198] sm:$0xff] }
0x132f   : > { %5551 = vmatprep.subr.mxu1 %v5316_v5 }
0x1330   : > { %v4757_v25 = vmul.f32 %v5276_v62, %v4749_v1  ;;  %5552 = vmatpush3.msra.mxu1 %v5300_v24 }
0x1331   : > { %v5928_v0 = vpop.eup %5927 }
0x1332   : > { %v4765_v2 = vadd.f32 %v5277_v26, %v4757_v25  ;;  %v4750_v63 = vmul.f32 %v5928_v0, %v6809_v3  ;;  %v5315_v3 = vld [vmem:[%s7026_s12 + $0x190] sm:$0xff] }
0x1333   : > { %5553 = vmatprep.subr.mxu1 %v5315_v3 }
0x1334   : > { %5295 = vmatmul.mubr.msk.f32.vlgmr.msra.gmra.mxu0 %vm677_vm1, %v4765_v2  ;;  %v4758_v28 = vmul.f32 %v5276_v62, %v4750_v63  ;;  %v5334_v62 = vld [vmem:[%s7029_s15 + $0x1] ss:$0 sm:$0xff] }
0x1335   : > { %4873 = vmatprep.mubr.f32.mxu0 %v5953_v19  ;;  %v5299_v19 = vld [vmem:[%s7026_s12 + $0x110] sm:$0xff] }
0x1336   : > { %v4766_v6 = vadd.f32 %v5277_v26, %v4758_v28  ;;  %5554 = vmatpush3.msra.mxu1 %v5299_v19 }
0x1337   : > { %5555 = vmatprep.subr.mxu1 %v5314_v7 }
0x1338   : > { %5296 = vmatmul.mubr.msk.f32.gmra.mxu0 %vm677_vm1, %v4766_v6  ;;  %5556 = vmatpush3.msra.mxu1 %v5298_v9 }
0x1339   : > { %5557 = vmatprep.subr.mxu1 %v5313_v11 }
0x133a   : > { %5558 = vmatpush3.msra.mxu1 %v5297_v13 }
0x13f4   : > { %v4869_v17 = vpop.f32.mrf.mxu0 }
0x13f5   : > { %v4870_v18 = vadd.f32 %v4869_v17, %v4790_v16 }
0x13f6   : > { %v4871_v20 = vpop.f32.mrf.mxu0 }
0x13f7   : > { %v4872_v21 = vadd.f32 %v4871_v20, %v4794_v58  ;;  %v4880_v27 = vmax.f32 %v4870_v18, 0.0 }
0x13f8   : > { %v4875_v22 = vpop.f32.mrf.mxu0 }
0x13f9   : > { %v4881_v23 = vmax.f32 %v4872_v21, 0.0  ;;  %v4876_v29 = vadd.f32 %v4875_v22, %v4790_v16 }
0x13fa   : > { %v4877_v30 = vpop.f32.mrf.mxu0 }
0x13fb   : > { %v4878_v31 = vadd.f32 %v4877_v30, %v4794_v58  ;;  %4989 = vmatprep.mubr.f32.mxu1 %v4881_v23  ;;  %v4882_v32 = vmax.f32 %v4876_v29, 0.0  ;;  %v5336_v30 = vld [vmem:[%s7031_s17] ss:$0 sm:$0xff] }
0x13fc   : > { %4990 = vmatmul.mubr.f32.vlgmr.msra.gmra.mxu1 %v4880_v27  ;;  %v5335_v27 = vld [vmem:[%s7030_s16] ss:$0 sm:$0xff] }
0x13fd   : > { %v4883_v8 = vmax.f32 %v4878_v31, 0.0 }
0x13ff   : > { %4994 = vmatprep.mubr.f32.mxu1 %v4883_v8 }
0x1400   : > { %4995 = vmatmul.mubr.f32.gmra.mxu1 %v4882_v32 }
0x14bc   : > { %v5559_v10 = vpop.f32.mrf.mxu1 }
0x14be   : > { %v5560_v12 = vpop.f32.mrf.mxu1 }
0x14bf   : > { %v5561_v33 = vadd.f32 %v5560_v12, %v5559_v10 }
0x14c0   : > { %v5562_v34 = vpop.f32.mrf.mxu1 }
0x14c1   : > { %v4992_v35 = vadd.f32 %v5561_v33, %v5330_v4 }
0x14c2   : > { %v5563_v36 = vpop.f32.mrf.mxu1 }
0x14c3   : > { %v5564_v37 = vadd.f32 %v5563_v36, %v5562_v34  ;;  %v5000_v38 = vadd.f32 %v4992_v35, %v4765_v2 }
0x14c5   : > { %v4997_v39 = vadd.f32 %v5564_v37, %v5330_v4  ;;  %v5006_v40 = vsel %vm677_vm1, %v5000_v38, 0.0 }
0x14c6   : > { %5007 = vadd.xlane.f32.xlu1 %v5006_v40 }
0x14c7   : > { %v5001_v41 = vadd.f32 %v4997_v39, %v4766_v6 }
0x14c9   : > { %v5009_v59 = vsel %vm677_vm1, %v5001_v41, 0.0 }
0x14ca   : > { %5010 = vadd.xlane.f32.xlu0 %v5009_v59 }
0x154f   : > { %v5008_v42 = vpop.xlane.xlu1 %5007 }
0x1550   : > { %v5012_v43 = vmul.f32 0.015625, %v5008_v42 }
0x1552   : > { %v5014_v44 = vsub.f32 %v5000_v38, %v5012_v43 }
0x1553   : > { %v5011_v45 = vpop.xlane.xlu0 %5010 }
0x1554   : > { %v5013_v46 = vmul.f32 0.015625, %v5011_v45  ;;  %v5016_v47 = vmul.f32 %v5014_v44, %v5014_v44 }
0x1556   : > { %v5015_v48 = vsub.f32 %v5001_v41, %v5013_v46  ;;  %v5018_v15 = vsel %vm677_vm1, %v5016_v47, 0.0 }
0x1557   : > { %5019 = vadd.xlane.f32.xlu1 %v5018_v15 }
0x1558   : > { %v5017_v49 = vmul.f32 %v5015_v48, %v5015_v48 }
0x155a   : > { %v5021_v50 = vsel %vm677_vm1, %v5017_v49, 0.0 }
0x155b   : > { %5022 = vadd.xlane.f32.xlu0 %v5021_v50 }
0x15e0   : > { %v5020_v51 = vpop.xlane.xlu1 %5019 }
0x15e1   : > { %v5024_v52 = vmul.f32 0.015625, %v5020_v51 }
0x15e3   : > { %v5026_v53 = vadd.f32 1e-05, %v5024_v52 }
0x15e4   : > { %v5023_v54 = vpop.xlane.xlu0 %5022 }
0x15e5   : > { %5929 = vrsqrt.f32 %v5026_v53  ;;  %v5025_v55 = vmul.f32 0.015625, %v5023_v54 }
0x15e7   : > { %v5027_v56 = vadd.f32 1e-05, %v5025_v55 }
0x15e9   : > { %5931 = vrsqrt.f32 %v5027_v56 }
0x15f2   : > { %v5930_v57 = vpop.eup %5929 }
0x15f3   : > { %v5030_v61 = vmul.f32 %v5930_v57, %v5014_v44 }
0x15f5   : > { %v5038_v1 = vmul.f32 %v5333_v60, %v5030_v61 }
0x15f6   : > { %v5932_v26 = vpop.eup %5931 }
0x15f7   : > { %v5046_v25 = vadd.f32 %v5334_v62, %v5038_v1  ;;  %v5031_v0 = vmul.f32 %v5932_v26, %v5015_v48 }
0x15f9   : > { %v5050_v2 = vsel %vm677_vm1, %v5046_v25, 0.0  ;;  %v5039_v63 = vmul.f32 %v5333_v60, %v5031_v0 }
0x15fa   : > { %5051 = vadd.xlane.f32.xlu1 %v5050_v2 }
0x15fb   : > { %v5047_v28 = vadd.f32 %v5334_v62, %v5039_v63 }
0x15fd   : > { %v5053_v6 = vsel %vm677_vm1, %v5047_v28, 0.0 }
0x15fe   : > { %5054 = vadd.xlane.f32.xlu0 %v5053_v6 }
0x1683   : > { %v5052_v5 = vpop.xlane.xlu1 %5051 }
0x1684   : > { %v5056_v24 = vmul.f32 0.015625, %v5052_v5 }
0x1686   : > { %v5058_v3 = vsub.f32 %v5046_v25, %v5056_v24 }
0x1687   : > { %v5055_v19 = vpop.xlane.xlu0 %5054 }
0x1688   : > { %v5057_v7 = vmul.f32 0.015625, %v5055_v19  ;;  %v5060_v9 = vmul.f32 %v5058_v3, %v5058_v3 }
0x168a   : > { %v5059_v11 = vsub.f32 %v5047_v28, %v5057_v7  ;;  %v5062_v13 = vsel %vm677_vm1, %v5060_v9, 0.0 }
0x168b   : > { %5063 = vadd.xlane.f32.xlu1 %v5062_v13 }
0x168c   : > { %v5061_v14 = vmul.f32 %v5059_v11, %v5059_v11 }
0x168e   : > { %v5065_v16 = vsel %vm677_vm1, %v5061_v14, 0.0 }
0x168f   : > { %5066 = vadd.xlane.f32.xlu0 %v5065_v16 }
0x1714   : > { %v5064_v58 = vpop.xlane.xlu1 %5063 }
0x1715   : > { %v5068_v17 = vmul.f32 0.015625, %v5064_v58 }
0x1717   : > { %v5070_v18 = vadd.f32 1e-06, %v5068_v17 }
0x1718   : > { %v5067_v20 = vpop.xlane.xlu0 %5066 }
0x1719   : > { %5933 = vrsqrt.f32 %v5070_v18  ;;  %v5069_v21 = vmul.f32 0.015625, %v5067_v20 }
0x171b   : > { %v5071_v22 = vadd.f32 1e-06, %v5069_v21 }
0x171d   : > { %5935 = vrsqrt.f32 %v5071_v22 }
0x1726   : > { %v5934_v23 = vpop.eup %5933 }
0x1727   : > { %v5074_v29 = vmul.f32 %v5934_v23, %v5058_v3 }
0x1729   : > { %v5082_v31 = vmul.f32 %v5335_v27, %v5074_v29 }
0x172a   : > { %v5936_v8 = vpop.eup %5935 }
0x172b   : > { %v5090_v32 = vadd.f32 %v5336_v30, %v5082_v31  ;;  %v5075_v10 = vmul.f32 %v5936_v8, %v5059_v11 }
0x172d   : > { %5092 = vst.msk [vmem:[%s575_s19] sm:$0xff] %vm677_vm1, %v5090_v32  ;;  %v5083_v4 = vmul.f32 %v5335_v27, %v5075_v10 }
0x172f   : > { %v5091_v12 = vadd.f32 %v5336_v30, %v5083_v4 }
0x1731   : > { %5093 = vst.msk [vmem:[%s575_s19 + $0x8] sm:$0xff] %vm677_vm1, %v5091_v12 }
0x1732 PF: > { %s28_s27 = sadd.s32 1, %s5943_s27  }
0x1733   : > { %p25_p4 = scmp.ge.s32.totalorder %s28_s27, 4  }
0x1735   :  { %27 = sbr.rel (!%p25_p4) target bundleno = 4 (0x4), region = 135 }

</bundles_post_ra>
